<compile_context>
chip_gen: v7x
topology: tpu7x:2x2x1
jax: 0.10.0
libtpu: 0.0.40
codegen_flags: <defaults>
</compile_context>

<pallas_src>
import functools
import math

import jax
import jax.numpy as jnp
from jax import lax
from jax.experimental import pallas as pl
from jax.experimental.pallas import tpu as pltpu


_LANE_UNIT = 128
_LANE_CAP = 1024            # keeps 3*ceil(bl/128) accumulator vregs resident
_LANE_HARD_MAX = 2048       # unaligned full-dim lane blocks above this -> fallback
_TARGET_BLOCK_BYTES = 4 * 1024 * 1024
_MAX_BLOCK_BYTES = 8 * 1024 * 1024
_MIN_BLOCK_BYTES = 64 * 1024
_MAX_ROW_CHUNKS = 64        # caps the unrolled fold-loop length
_SMALL_BYPASS_BYTES = 1 << 20   # < 1 MiB: plain XLA reduce beats kernel dispatch


def _sublane_unit(itemsize):
    # sub-32-bit dtypes pack along sublanes: one vreg = (8,128) f32 / (16,128)
    # bf16 / (32,128) int8.
    return {1: 32, 2: 16}.get(int(itemsize), 8)


def _aligned_divisor(dim, unit, cap):
    """Largest d <= cap with d % unit == 0 and dim % d == 0, or None."""
    for k in range(min(cap, dim) // unit, 0, -1):
        d = k * unit
        if dim % d == 0:
            return d
    return None


def _plan_2d_view(shape, itemsize):
    """Pick a zero-copy 2-D factorization (R, L) of `shape` plus a block
    (br, bl) that tiles it exactly.  Returns (R, L, br, bl, sub_r) or None."""
    sub_r = _sublane_unit(itemsize)
    best_key, best = None, None
    for i in range(len(shape) + 1):
        R = int(math.prod(shape[:i]))
        L = int(math.prod(shape[i:]))
        if R == 0 or L == 0:
            continue
        bl = _aligned_divisor(L, _LANE_UNIT, _LANE_CAP)
        lane_aligned = bl is not None
        if not lane_aligned:
            if L > _LANE_HARD_MAX:
                continue
            bl = L                                   # full-dim block is legal
        row_cap = max(sub_r, min(_MAX_ROW_CHUNKS * sub_r,
                                 (_TARGET_BLOCK_BYTES // (bl * itemsize)
                                  // sub_r) * sub_r))
        br = _aligned_divisor(R, sub_r, row_cap)
        row_aligned = br is not None
        if not row_aligned:
            br = R                                   # full-dim block is legal
        blk_bytes = br * bl * itemsize
        if blk_bytes > _MAX_BLOCK_BYTES:
            continue
        # Prefer >= 2 row-blocks (megacore split across the two TCs on v7x)
        # as long as blocks stay >= 512 KiB (tile-size roofline plateau).
        if row_aligned and R // br == 1 and R >= 2 * sub_r:
            br2 = _aligned_divisor(R, sub_r, min(row_cap, R // 2))
            if br2 is not None and br2 * bl * itemsize >= max(_MIN_BLOCK_BYTES,
                                                              512 * 1024):
                br = br2
                blk_bytes = br * bl * itemsize
        key = (lane_aligned, row_aligned,
               min(blk_bytes, _TARGET_BLOCK_BYTES),   # bigger blocks amortize
               R // br >= 2,                          # megacore-friendly
               bl)
        if best_key is None or key > best_key:
            best_key, best = key, (R, L, br, bl)
    if best is None:
        return None
    R, L, br, bl = best
    if br * bl * itemsize < _MIN_BLOCK_BYTES:
        return None       # tiny blocks: plain XLA reduce is faster
    return R, L, br, bl, min(_sublane_unit(itemsize), br)


def _minmax_kernel(x_ref, min_out_ref, max_out_ref, min_sc, max_sc):
    j = pl.program_id(1)
    br, bl = x_ref.shape
    sub_r = min_sc.shape[0]
    nfull = br // sub_r
    rem = br - nfull * sub_r

    # --- fold the block over (sub_r, bl) sub-tiles, accumulators live in vregs
    #     in the NATIVE dtype (1 vld + 2 VALU per input vreg, no VMEM stores).
    def fold(k, carry):
        mn, mx = carry
        row = pl.multiple_of(k * sub_r, sub_r)
        xk = x_ref[pl.ds(row, sub_r), :]
        return jnp.minimum(mn, xk), jnp.maximum(mx, xk)

    x0 = x_ref[pl.ds(0, sub_r), :]
    mn, mx = x0, x0
    if nfull > 1:
        mn, mx = lax.fori_loop(1, nfull, fold, (mn, mx), unroll=True)
    if rem > 0:
        # Ragged row tail: re-read the last sub_r rows (overlap is harmless
        # for min/max) so every chunk has the same static shape.
        xt = x_ref[pl.ds(br - sub_r, sub_r), :]
        mn = jnp.minimum(mn, xt)
        mx = jnp.maximum(mx, xt)

    # Single small f32 cast per grid step (monotone, so identical result).
    mn32 = mn.astype(jnp.float32)
    mx32 = mx.astype(jnp.float32)

    @pl.when(j == 0)
    def _init():
        min_sc[...] = mn32
        max_sc[...] = mx32

    @pl.when(j > 0)
    def _merge():
        min_sc[...] = jnp.minimum(min_sc[...], mn32)
        max_sc[...] = jnp.maximum(max_sc[...], mx32)

    @pl.when(j == pl.num_programs(1) - 1)
    def _finalize():
        # Single cross-lane/sublane reduce of the tiny (sub_r, bl) scratch;
        # write a lane-dense (8, 128) partial for this row-block.
        min_out_ref[...] = jnp.broadcast_to(jnp.min(min_sc[...]),
                                            min_out_ref.shape)
        max_out_ref[...] = jnp.broadcast_to(jnp.max(max_sc[...]),
                                            max_out_ref.shape)


@functools.partial(jax.jit, static_argnames=("R", "L", "br", "bl", "sub_r"))
def _minmax_reduce(x, *, R, L, br, bl, sub_r):
    """Global (min, max) of `x` (any dtype), returned as float32 scalars."""
    x2d = x.reshape(R, L)          # contiguous split -> layout bitcast, no copy
    gi, gj = R // br, L // bl
    part_min, part_max = pl.pallas_call(
        _minmax_kernel,
        out_shape=(jax.ShapeDtypeStruct((gi * 8, 128), jnp.float32),
                   jax.ShapeDtypeStruct((gi * 8, 128), jnp.float32)),
        grid_spec=pltpu.PrefetchScalarGridSpec(
            num_scalar_prefetch=0,
            grid=(gi, gj),
            in_specs=[pl.BlockSpec((br, bl), lambda i, j: (i, j))],
            out_specs=[pl.BlockSpec((8, 128), lambda i, j: (i, 0)),
                       pl.BlockSpec((8, 128), lambda i, j: (i, 0))],
            scratch_shapes=[pltpu.VMEM((sub_r, bl), jnp.float32),
                            pltpu.VMEM((sub_r, bl), jnp.float32)],
        ),
        compiler_params=pltpu.CompilerParams(
            dimension_semantics=("parallel", "arbitrary"),
            vmem_limit_bytes=32 * 1024 * 1024),
    )(x2d)
    # Fold the tiny per-row-block partials in plain JAX.
    return jnp.min(part_min), jnp.max(part_max)


class MinMaxObserver:
    """Per-tensor running min/max observer (mirrors torch.ao MinMaxObserver)."""

    def __init__(self, dtype="quint8", qscheme="per_tensor_affine",
                 reduce_range=False, quant_min=None, quant_max=None,
                 eps=float(jnp.finfo(jnp.float32).eps)):
        assert qscheme in ("per_tensor_affine", "per_tensor_symmetric"), \
            "MinMaxObserver only supports per-tensor qschemes."
        if qscheme == "per_tensor_symmetric" and reduce_range and dtype == "quint8":
            raise NotImplementedError(
                "Cannot reduce range for symmetric quantization for quint8")
        self.dtype = dtype
        self.qscheme = qscheme
        self.reduce_range = reduce_range
        self.eps = float(eps)
        self.has_customized_qrange = quant_min is not None and quant_max is not None
        if self.has_customized_qrange:
            assert quant_min <= 0 <= quant_max and quant_min < quant_max
            self.quant_min, self.quant_max = int(quant_min), int(quant_max)
        else:
            self.quant_min, self.quant_max = self._default_qrange(dtype, reduce_range)
        self.reset_min_max_vals()

    @staticmethod
    def _default_qrange(dtype, reduce_range):
        if dtype in ("quint8", "uint8"):
            return (0, 127) if reduce_range else (0, 255)
        if dtype in ("qint8", "int8"):
            return (-64, 63) if reduce_range else (-128, 127)
        if dtype in ("qint32", "int32"):
            return (-(2 ** 31), 2 ** 31 - 1)
        if dtype == "uint16":
            return (0, 2 ** 16 - 1)
        if dtype == "int16":
            return (-(2 ** 15), 2 ** 15 - 1)
        return (0, 255)

    def reset_min_max_vals(self):
        self.min_val = jnp.asarray(jnp.inf, dtype=jnp.float32)
        self.max_val = jnp.asarray(-jnp.inf, dtype=jnp.float32)

    def __call__(self, x_orig):
        """Records running min/max of ``x_orig``; returns ``x_orig`` unchanged."""
        if x_orig.size == 0:
            return x_orig
        x = jnp.asarray(x_orig)
        itemsize = int(jnp.dtype(x.dtype).itemsize)
        shape = tuple(int(d) for d in x.shape)
        plan = None
        if x.size * itemsize >= _SMALL_BYPASS_BYTES:
            plan = _plan_2d_view(shape, itemsize)
        if plan is not None:
            R, L, br, bl, sub_r = plan
            cur_min, cur_max = _minmax_reduce(x, R=R, L=L, br=br, bl=bl, sub_r=sub_r)
        else:
            # Small tensors (kernel-dispatch overhead dominates) or pathological
            # shapes with no aligned factorization: XLA's fused reduce is 1x
            # HBM traffic (no padded copy like the previous fallback).
            cur_min = jnp.min(x).astype(jnp.float32)
            cur_max = jnp.max(x).astype(jnp.float32)
        self.min_val = jnp.minimum(self.min_val, cur_min.astype(jnp.float32))
        self.max_val = jnp.maximum(self.max_val, cur_max.astype(jnp.float32))
        return x_orig

    forward = __call__

    def calculate_qparams(self):
        min_val, max_val = self.min_val, self.max_val
        quant_min, quant_max = self.quant_min, self.quant_max
        valid = min_val <= max_val          # False while still uninitialized
        eps = jnp.float32(self.eps)

        min_val_neg = jnp.minimum(min_val, 0.0)
        max_val_pos = jnp.maximum(max_val, 0.0)

        if self.qscheme == "per_tensor_symmetric":
            max_val_pos = jnp.maximum(-min_val_neg, max_val_pos)
            scale = max_val_pos / (float(quant_max - quant_min) / 2.0)
            scale = jnp.maximum(scale, eps)
            if self.dtype in ("quint8", "uint8"):
                zp = (quant_min + quant_max) // 2 if self.has_customized_qrange else 128
            elif self.dtype == "uint16":
                zp = 2 ** 15
            else:
                zp = 0
            zero_point = jnp.asarray(zp, dtype=jnp.int32)
        else:  # per_tensor_affine
            scale = (max_val_pos - min_val_neg) / float(quant_max - quant_min)
            scale = jnp.maximum(scale, eps)
            zero_point = quant_min - jnp.round(min_val_neg / scale).astype(jnp.int32)
            zero_point = jnp.clip(zero_point, quant_min, quant_max).astype(jnp.int32)

        scale = jnp.where(valid, scale, jnp.float32(1.0))
        zero_point = jnp.where(valid, zero_point, jnp.int32(0))
        return (scale.reshape(1).astype(jnp.float32),
                zero_point.reshape(1).astype(jnp.int32))

    def extra_repr(self):
        return f"min_val={self.min_val}, max_val={self.max_val}"


if __name__ == "__main__":
    key = jax.random.PRNGKey(0)
    k1, k2, k3, k4 = jax.random.split(key, 4)

    # --- per-tensor affine quint8 observer, two forward calls (running stats).
    #     Small activation (8 KiB) -> small-tensor bypass path.
    x1 = jax.random.normal(k1, (2, 4, 16, 16), dtype=jnp.float32)
    x2 = 3.0 * jax.random.normal(k2, (2, 4, 16, 16), dtype=jnp.float32) + 0.5
    obs = MinMaxObserver(dtype="quint8", qscheme="per_tensor_affine")
    y1 = obs(x1)
    y2 = obs(x2)
    jax.block_until_ready((y1, y2))
    scale, zp = obs.calculate_qparams()
    jax.block_until_ready((scale, zp))

    ref_min = jnp.minimum(jnp.min(x1), jnp.min(x2))
    ref_max = jnp.maximum(jnp.max(x1), jnp.max(x2))
    assert jnp.array_equal(y1, x1) and jnp.array_equal(y2, x2)   # pass-through
    assert jnp.allclose(obs.min_val, ref_min)
    assert jnp.allclose(obs.max_val, ref_max)
    rmin = jnp.minimum(ref_min, 0.0)
    rmax = jnp.maximum(ref_max, 0.0)
    ref_scale = jnp.maximum((rmax - rmin) / 255.0, jnp.finfo(jnp.float32).eps)
    ref_zp = jnp.clip(0 - jnp.round(rmin / ref_scale), 0, 255)
    assert jnp.allclose(scale[0], ref_scale)
    assert abs(int(zp[0]) - int(ref_zp)) <= 1

    # --- larger f32 input through the Pallas kernel (multi row-block grid).
    xc = jax.random.normal(k3, (640, 4096), dtype=jnp.float32) * 2.0 - 1.0
    obs_c = MinMaxObserver(dtype="quint8", qscheme="per_tensor_affine")
    jax.block_until_ready(obs_c(xc))
    assert jnp.allclose(obs_c.min_val, jnp.min(xc))
    assert jnp.allclose(obs_c.max_val, jnp.max(xc))

    # --- bf16 input through the kernel (native bf16 accumulation, sub_r=16),
    #     symmetric qint8 observer.
    xb = jax.random.normal(k4, (512, 2048), dtype=jnp.bfloat16)
    obs_s = MinMaxObserver(dtype="qint8", qscheme="per_tensor_symmetric")
    jax.block_until_ready(obs_s(xb))
    ss, zs = obs_s.calculate_qparams()
    jax.block_until_ready((ss, zs))
    xb32 = xb.astype(jnp.float32)
    assert jnp.allclose(obs_s.min_val, jnp.min(xb32))
    assert jnp.allclose(obs_s.max_val, jnp.max(xb32))
    ref_ss = jnp.maximum(
        jnp.maximum(-jnp.minimum(jnp.min(xb32), 0.0),
                    jnp.maximum(jnp.max(xb32), 0.0)) / 127.5,
        jnp.finfo(jnp.float32).eps)
    assert jnp.allclose(ss[0], ref_ss)
    assert int(zs[0]) == 0

    print("KERNEL_OK")
</pallas_src>

<mosaic_0001>
module attributes {stable_mosaic.version = 11 : i64} {
  func.func @_minmax_kernel(%arg0: i32, %arg1: i32, %arg2: memref<320x1024xf32, #tpu.memory_space<vmem>>, %arg3: memref<8x128xf32, #tpu.memory_space<vmem>>, %arg4: memref<8x128xf32, #tpu.memory_space<vmem>>, %arg5: memref<8x1024xf32, #tpu.memory_space<vmem>>, %arg6: memref<8x1024xf32, #tpu.memory_space<vmem>>) attributes {dimension_semantics = [#tpu.dimension_semantics<parallel>, #tpu.dimension_semantics<arbitrary>], iteration_bounds = array<i64: 2, 4>, scalar_prefetch = 0 : i64, scratch_operands = 2 : i64, tpu.core_type = #tpu.core_type<tc>, window_params = [{transform_indices = @transform_0, window_bounds = array<i64: 320, 1024>}, {transform_indices = @transform_1, window_bounds = array<i64: 8, 128>}, {transform_indices = @transform_2, window_bounds = array<i64: 8, 128>}]} {
    %c0 = arith.constant 0 : index
    %c0_0 = arith.constant 0 : index
    %0 = vector.load %arg2[%c0, %c0_0] : memref<320x1024xf32, #tpu.memory_space<vmem>>, vector<8x1024xf32>
    %c1_i32 = arith.constant 1 : i32
    %c8_i32 = arith.constant 8 : i32
    %1 = arith.muli %c1_i32, %c8_i32 : i32
    %2 = tpu.assume_multiple %1, 8 : i32
    %3 = arith.index_cast %2 : i32 to index
    %c0_1 = arith.constant 0 : index
    %4 = vector.load %arg2[%3, %c0_1] : memref<320x1024xf32, #tpu.memory_space<vmem>>, vector<8x1024xf32>
    %5 = arith.minimumf %0, %4 : vector<8x1024xf32>
    %6 = arith.maximumf %0, %4 : vector<8x1024xf32>
    %c2_i32 = arith.constant 2 : i32
    %c8_i32_2 = arith.constant 8 : i32
    %7 = arith.muli %c2_i32, %c8_i32_2 : i32
    %8 = tpu.assume_multiple %7, 8 : i32
    %9 = arith.index_cast %8 : i32 to index
    %c0_3 = arith.constant 0 : index
    %10 = vector.load %arg2[%9, %c0_3] : memref<320x1024xf32, #tpu.memory_space<vmem>>, vector<8x1024xf32>
    %11 = arith.minimumf %5, %10 : vector<8x1024xf32>
    %12 = arith.maximumf %6, %10 : vector<8x1024xf32>
    %c3_i32 = arith.constant 3 : i32
    %c8_i32_4 = arith.constant 8 : i32
    %13 = arith.muli %c3_i32, %c8_i32_4 : i32
    %14 = tpu.assume_multiple %13, 8 : i32
    %15 = arith.index_cast %14 : i32 to index
    %c0_5 = arith.constant 0 : index
    %16 = vector.load %arg2[%15, %c0_5] : memref<320x1024xf32, #tpu.memory_space<vmem>>, vector<8x1024xf32>
    %17 = arith.minimumf %11, %16 : vector<8x1024xf32>
    %18 = arith.maximumf %12, %16 : vector<8x1024xf32>
    %c4_i32 = arith.constant 4 : i32
    %c8_i32_6 = arith.constant 8 : i32
    %19 = arith.muli %c4_i32, %c8_i32_6 : i32
    %20 = tpu.assume_multiple %19, 8 : i32
    %21 = arith.index_cast %20 : i32 to index
    %c0_7 = arith.constant 0 : index
    %22 = vector.load %arg2[%21, %c0_7] : memref<320x1024xf32, #tpu.memory_space<vmem>>, vector<8x1024xf32>
    %23 = arith.minimumf %17, %22 : vector<8x1024xf32>
    %24 = arith.maximumf %18, %22 : vector<8x1024xf32>
    %c5_i32 = arith.constant 5 : i32
    %c8_i32_8 = arith.constant 8 : i32
    %25 = arith.muli %c5_i32, %c8_i32_8 : i32
    %26 = tpu.assume_multiple %25, 8 : i32
    %27 = arith.index_cast %26 : i32 to index
    %c0_9 = arith.constant 0 : index
    %28 = vector.load %arg2[%27, %c0_9] : memref<320x1024xf32, #tpu.memory_space<vmem>>, vector<8x1024xf32>
    %29 = arith.minimumf %23, %28 : vector<8x1024xf32>
    %30 = arith.maximumf %24, %28 : vector<8x1024xf32>
    %c6_i32 = arith.constant 6 : i32
    %c8_i32_10 = arith.constant 8 : i32
    %31 = arith.muli %c6_i32, %c8_i32_10 : i32
    %32 = tpu.assume_multiple %31, 8 : i32
    %33 = arith.index_cast %32 : i32 to index
    %c0_11 = arith.constant 0 : index
    %34 = vector.load %arg2[%33, %c0_11] : memref<320x1024xf32, #tpu.memory_space<vmem>>, vector<8x1024xf32>
    %35 = arith.minimumf %29, %34 : vector<8x1024xf32>
    %36 = arith.maximumf %30, %34 : vector<8x1024xf32>
    %c7_i32 = arith.constant 7 : i32
    %c8_i32_12 = arith.constant 8 : i32
    %37 = arith.muli %c7_i32, %c8_i32_12 : i32
    %38 = tpu.assume_multiple %37, 8 : i32
    %39 = arith.index_cast %38 : i32 to index
    %c0_13 = arith.constant 0 : index
    %40 = vector.load %arg2[%39, %c0_13] : memref<320x1024xf32, #tpu.memory_space<vmem>>, vector<8x1024xf32>
    %41 = arith.minimumf %35, %40 : vector<8x1024xf32>
    %42 = arith.maximumf %36, %40 : vector<8x1024xf32>
    %c8_i32_14 = arith.constant 8 : i32
    %c8_i32_15 = arith.constant 8 : i32
    %43 = arith.muli %c8_i32_14, %c8_i32_15 : i32
    %44 = tpu.assume_multiple %43, 8 : i32
    %45 = arith.index_cast %44 : i32 to index
    %c0_16 = arith.constant 0 : index
    %46 = vector.load %arg2[%45, %c0_16] : memref<320x1024xf32, #tpu.memory_space<vmem>>, vector<8x1024xf32>
    %47 = arith.minimumf %41, %46 : vector<8x1024xf32>
    %48 = arith.maximumf %42, %46 : vector<8x1024xf32>
    %c9_i32 = arith.constant 9 : i32
    %c8_i32_17 = arith.constant 8 : i32
    %49 = arith.muli %c9_i32, %c8_i32_17 : i32
    %50 = tpu.assume_multiple %49, 8 : i32
    %51 = arith.index_cast %50 : i32 to index
    %c0_18 = arith.constant 0 : index
    %52 = vector.load %arg2[%51, %c0_18] : memref<320x1024xf32, #tpu.memory_space<vmem>>, vector<8x1024xf32>
    %53 = arith.minimumf %47, %52 : vector<8x1024xf32>
    %54 = arith.maximumf %48, %52 : vector<8x1024xf32>
    %c10_i32 = arith.constant 10 : i32
    %c8_i32_19 = arith.constant 8 : i32
    %55 = arith.muli %c10_i32, %c8_i32_19 : i32
    %56 = tpu.assume_multiple %55, 8 : i32
    %57 = arith.index_cast %56 : i32 to index
    %c0_20 = arith.constant 0 : index
    %58 = vector.load %arg2[%57, %c0_20] : memref<320x1024xf32, #tpu.memory_space<vmem>>, vector<8x1024xf32>
    %59 = arith.minimumf %53, %58 : vector<8x1024xf32>
    %60 = arith.maximumf %54, %58 : vector<8x1024xf32>
    %c11_i32 = arith.constant 11 : i32
    %c8_i32_21 = arith.constant 8 : i32
    %61 = arith.muli %c11_i32, %c8_i32_21 : i32
    %62 = tpu.assume_multiple %61, 8 : i32
    %63 = arith.index_cast %62 : i32 to index
    %c0_22 = arith.constant 0 : index
    %64 = vector.load %arg2[%63, %c0_22] : memref<320x1024xf32, #tpu.memory_space<vmem>>, vector<8x1024xf32>
    %65 = arith.minimumf %59, %64 : vector<8x1024xf32>
    %66 = arith.maximumf %60, %64 : vector<8x1024xf32>
    %c12_i32 = arith.constant 12 : i32
    %c8_i32_23 = arith.constant 8 : i32
    %67 = arith.muli %c12_i32, %c8_i32_23 : i32
    %68 = tpu.assume_multiple %67, 8 : i32
    %69 = arith.index_cast %68 : i32 to index
    %c0_24 = arith.constant 0 : index
    %70 = vector.load %arg2[%69, %c0_24] : memref<320x1024xf32, #tpu.memory_space<vmem>>, vector<8x1024xf32>
    %71 = arith.minimumf %65, %70 : vector<8x1024xf32>
    %72 = arith.maximumf %66, %70 : vector<8x1024xf32>
    %c13_i32 = arith.constant 13 : i32
    %c8_i32_25 = arith.constant 8 : i32
    %73 = arith.muli %c13_i32, %c8_i32_25 : i32
    %74 = tpu.assume_multiple %73, 8 : i32
    %75 = arith.index_cast %74 : i32 to index
    %c0_26 = arith.constant 0 : index
    %76 = vector.load %arg2[%75, %c0_26] : memref<320x1024xf32, #tpu.memory_space<vmem>>, vector<8x1024xf32>
    %77 = arith.minimumf %71, %76 : vector<8x1024xf32>
    %78 = arith.maximumf %72, %76 : vector<8x1024xf32>
    %c14_i32 = arith.constant 14 : i32
    %c8_i32_27 = arith.constant 8 : i32
    %79 = arith.muli %c14_i32, %c8_i32_27 : i32
    %80 = tpu.assume_multiple %79, 8 : i32
    %81 = arith.index_cast %80 : i32 to index
    %c0_28 = arith.constant 0 : index
    %82 = vector.load %arg2[%81, %c0_28] : memref<320x1024xf32, #tpu.memory_space<vmem>>, vector<8x1024xf32>
    %83 = arith.minimumf %77, %82 : vector<8x1024xf32>
    %84 = arith.maximumf %78, %82 : vector<8x1024xf32>
    %c15_i32 = arith.constant 15 : i32
    %c8_i32_29 = arith.constant 8 : i32
    %85 = arith.muli %c15_i32, %c8_i32_29 : i32
    %86 = tpu.assume_multiple %85, 8 : i32
    %87 = arith.index_cast %86 : i32 to index
    %c0_30 = arith.constant 0 : index
    %88 = vector.load %arg2[%87, %c0_30] : memref<320x1024xf32, #tpu.memory_space<vmem>>, vector<8x1024xf32>
    %89 = arith.minimumf %83, %88 : vector<8x1024xf32>
    %90 = arith.maximumf %84, %88 : vector<8x1024xf32>
    %c16_i32 = arith.constant 16 : i32
    %c8_i32_31 = arith.constant 8 : i32
    %91 = arith.muli %c16_i32, %c8_i32_31 : i32
    %92 = tpu.assume_multiple %91, 8 : i32
    %93 = arith.index_cast %92 : i32 to index
    %c0_32 = arith.constant 0 : index
    %94 = vector.load %arg2[%93, %c0_32] : memref<320x1024xf32, #tpu.memory_space<vmem>>, vector<8x1024xf32>
    %95 = arith.minimumf %89, %94 : vector<8x1024xf32>
    %96 = arith.maximumf %90, %94 : vector<8x1024xf32>
    %c17_i32 = arith.constant 17 : i32
    %c8_i32_33 = arith.constant 8 : i32
    %97 = arith.muli %c17_i32, %c8_i32_33 : i32
    %98 = tpu.assume_multiple %97, 8 : i32
    %99 = arith.index_cast %98 : i32 to index
    %c0_34 = arith.constant 0 : index
    %100 = vector.load %arg2[%99, %c0_34] : memref<320x1024xf32, #tpu.memory_space<vmem>>, vector<8x1024xf32>
    %101 = arith.minimumf %95, %100 : vector<8x1024xf32>
    %102 = arith.maximumf %96, %100 : vector<8x1024xf32>
    %c18_i32 = arith.constant 18 : i32
    %c8_i32_35 = arith.constant 8 : i32
    %103 = arith.muli %c18_i32, %c8_i32_35 : i32
    %104 = tpu.assume_multiple %103, 8 : i32
    %105 = arith.index_cast %104 : i32 to index
    %c0_36 = arith.constant 0 : index
    %106 = vector.load %arg2[%105, %c0_36] : memref<320x1024xf32, #tpu.memory_space<vmem>>, vector<8x1024xf32>
    %107 = arith.minimumf %101, %106 : vector<8x1024xf32>
    %108 = arith.maximumf %102, %106 : vector<8x1024xf32>
    %c19_i32 = arith.constant 19 : i32
    %c8_i32_37 = arith.constant 8 : i32
    %109 = arith.muli %c19_i32, %c8_i32_37 : i32
    %110 = tpu.assume_multiple %109, 8 : i32
    %111 = arith.index_cast %110 : i32 to index
    %c0_38 = arith.constant 0 : index
    %112 = vector.load %arg2[%111, %c0_38] : memref<320x1024xf32, #tpu.memory_space<vmem>>, vector<8x1024xf32>
    %113 = arith.minimumf %107, %112 : vector<8x1024xf32>
    %114 = arith.maximumf %108, %112 : vector<8x1024xf32>
    %c20_i32 = arith.constant 20 : i32
    %c8_i32_39 = arith.constant 8 : i32
    %115 = arith.muli %c20_i32, %c8_i32_39 : i32
    %116 = tpu.assume_multiple %115, 8 : i32
    %117 = arith.index_cast %116 : i32 to index
    %c0_40 = arith.constant 0 : index
    %118 = vector.load %arg2[%117, %c0_40] : memref<320x1024xf32, #tpu.memory_space<vmem>>, vector<8x1024xf32>
    %119 = arith.minimumf %113, %118 : vector<8x1024xf32>
    %120 = arith.maximumf %114, %118 : vector<8x1024xf32>
    %c21_i32 = arith.constant 21 : i32
    %c8_i32_41 = arith.constant 8 : i32
    %121 = arith.muli %c21_i32, %c8_i32_41 : i32
    %122 = tpu.assume_multiple %121, 8 : i32
    %123 = arith.index_cast %122 : i32 to index
    %c0_42 = arith.constant 0 : index
    %124 = vector.load %arg2[%123, %c0_42] : memref<320x1024xf32, #tpu.memory_space<vmem>>, vector<8x1024xf32>
    %125 = arith.minimumf %119, %124 : vector<8x1024xf32>
    %126 = arith.maximumf %120, %124 : vector<8x1024xf32>
    %c22_i32 = arith.constant 22 : i32
    %c8_i32_43 = arith.constant 8 : i32
    %127 = arith.muli %c22_i32, %c8_i32_43 : i32
    %128 = tpu.assume_multiple %127, 8 : i32
    %129 = arith.index_cast %128 : i32 to index
    %c0_44 = arith.constant 0 : index
    %130 = vector.load %arg2[%129, %c0_44] : memref<320x1024xf32, #tpu.memory_space<vmem>>, vector<8x1024xf32>
    %131 = arith.minimumf %125, %130 : vector<8x1024xf32>
    %132 = arith.maximumf %126, %130 : vector<8x1024xf32>
    %c23_i32 = arith.constant 23 : i32
    %c8_i32_45 = arith.constant 8 : i32
    %133 = arith.muli %c23_i32, %c8_i32_45 : i32
    %134 = tpu.assume_multiple %133, 8 : i32
    %135 = arith.index_cast %134 : i32 to index
    %c0_46 = arith.constant 0 : index
    %136 = vector.load %arg2[%135, %c0_46] : memref<320x1024xf32, #tpu.memory_space<vmem>>, vector<8x1024xf32>
    %137 = arith.minimumf %131, %136 : vector<8x1024xf32>
    %138 = arith.maximumf %132, %136 : vector<8x1024xf32>
    %c24_i32 = arith.constant 24 : i32
    %c8_i32_47 = arith.constant 8 : i32
    %139 = arith.muli %c24_i32, %c8_i32_47 : i32
    %140 = tpu.assume_multiple %139, 8 : i32
    %141 = arith.index_cast %140 : i32 to index
    %c0_48 = arith.constant 0 : index
    %142 = vector.load %arg2[%141, %c0_48] : memref<320x1024xf32, #tpu.memory_space<vmem>>, vector<8x1024xf32>
    %143 = arith.minimumf %137, %142 : vector<8x1024xf32>
    %144 = arith.maximumf %138, %142 : vector<8x1024xf32>
    %c25_i32 = arith.constant 25 : i32
    %c8_i32_49 = arith.constant 8 : i32
    %145 = arith.muli %c25_i32, %c8_i32_49 : i32
    %146 = tpu.assume_multiple %145, 8 : i32
    %147 = arith.index_cast %146 : i32 to index
    %c0_50 = arith.constant 0 : index
    %148 = vector.load %arg2[%147, %c0_50] : memref<320x1024xf32, #tpu.memory_space<vmem>>, vector<8x1024xf32>
    %149 = arith.minimumf %143, %148 : vector<8x1024xf32>
    %150 = arith.maximumf %144, %148 : vector<8x1024xf32>
    %c26_i32 = arith.constant 26 : i32
    %c8_i32_51 = arith.constant 8 : i32
    %151 = arith.muli %c26_i32, %c8_i32_51 : i32
    %152 = tpu.assume_multiple %151, 8 : i32
    %153 = arith.index_cast %152 : i32 to index
    %c0_52 = arith.constant 0 : index
    %154 = vector.load %arg2[%153, %c0_52] : memref<320x1024xf32, #tpu.memory_space<vmem>>, vector<8x1024xf32>
    %155 = arith.minimumf %149, %154 : vector<8x1024xf32>
    %156 = arith.maximumf %150, %154 : vector<8x1024xf32>
    %c27_i32 = arith.constant 27 : i32
    %c8_i32_53 = arith.constant 8 : i32
    %157 = arith.muli %c27_i32, %c8_i32_53 : i32
    %158 = tpu.assume_multiple %157, 8 : i32
    %159 = arith.index_cast %158 : i32 to index
    %c0_54 = arith.constant 0 : index
    %160 = vector.load %arg2[%159, %c0_54] : memref<320x1024xf32, #tpu.memory_space<vmem>>, vector<8x1024xf32>
    %161 = arith.minimumf %155, %160 : vector<8x1024xf32>
    %162 = arith.maximumf %156, %160 : vector<8x1024xf32>
    %c28_i32 = arith.constant 28 : i32
    %c8_i32_55 = arith.constant 8 : i32
    %163 = arith.muli %c28_i32, %c8_i32_55 : i32
    %164 = tpu.assume_multiple %163, 8 : i32
    %165 = arith.index_cast %164 : i32 to index
    %c0_56 = arith.constant 0 : index
    %166 = vector.load %arg2[%165, %c0_56] : memref<320x1024xf32, #tpu.memory_space<vmem>>, vector<8x1024xf32>
    %167 = arith.minimumf %161, %166 : vector<8x1024xf32>
    %168 = arith.maximumf %162, %166 : vector<8x1024xf32>
    %c29_i32 = arith.constant 29 : i32
    %c8_i32_57 = arith.constant 8 : i32
    %169 = arith.muli %c29_i32, %c8_i32_57 : i32
    %170 = tpu.assume_multiple %169, 8 : i32
    %171 = arith.index_cast %170 : i32 to index
    %c0_58 = arith.constant 0 : index
    %172 = vector.load %arg2[%171, %c0_58] : memref<320x1024xf32, #tpu.memory_space<vmem>>, vector<8x1024xf32>
    %173 = arith.minimumf %167, %172 : vector<8x1024xf32>
    %174 = arith.maximumf %168, %172 : vector<8x1024xf32>
    %c30_i32 = arith.constant 30 : i32
    %c8_i32_59 = arith.constant 8 : i32
    %175 = arith.muli %c30_i32, %c8_i32_59 : i32
    %176 = tpu.assume_multiple %175, 8 : i32
    %177 = arith.index_cast %176 : i32 to index
    %c0_60 = arith.constant 0 : index
    %178 = vector.load %arg2[%177, %c0_60] : memref<320x1024xf32, #tpu.memory_space<vmem>>, vector<8x1024xf32>
    %179 = arith.minimumf %173, %178 : vector<8x1024xf32>
    %180 = arith.maximumf %174, %178 : vector<8x1024xf32>
    %c31_i32 = arith.constant 31 : i32
    %c8_i32_61 = arith.constant 8 : i32
    %181 = arith.muli %c31_i32, %c8_i32_61 : i32
    %182 = tpu.assume_multiple %181, 8 : i32
    %183 = arith.index_cast %182 : i32 to index
    %c0_62 = arith.constant 0 : index
    %184 = vector.load %arg2[%183, %c0_62] : memref<320x1024xf32, #tpu.memory_space<vmem>>, vector<8x1024xf32>
    %185 = arith.minimumf %179, %184 : vector<8x1024xf32>
    %186 = arith.maximumf %180, %184 : vector<8x1024xf32>
    %c32_i32 = arith.constant 32 : i32
    %c8_i32_63 = arith.constant 8 : i32
    %187 = arith.muli %c32_i32, %c8_i32_63 : i32
    %188 = tpu.assume_multiple %187, 8 : i32
    %189 = arith.index_cast %188 : i32 to index
    %c0_64 = arith.constant 0 : index
    %190 = vector.load %arg2[%189, %c0_64] : memref<320x1024xf32, #tpu.memory_space<vmem>>, vector<8x1024xf32>
    %191 = arith.minimumf %185, %190 : vector<8x1024xf32>
    %192 = arith.maximumf %186, %190 : vector<8x1024xf32>
    %c33_i32 = arith.constant 33 : i32
    %c8_i32_65 = arith.constant 8 : i32
    %193 = arith.muli %c33_i32, %c8_i32_65 : i32
    %194 = tpu.assume_multiple %193, 8 : i32
    %195 = arith.index_cast %194 : i32 to index
    %c0_66 = arith.constant 0 : index
    %196 = vector.load %arg2[%195, %c0_66] : memref<320x1024xf32, #tpu.memory_space<vmem>>, vector<8x1024xf32>
    %197 = arith.minimumf %191, %196 : vector<8x1024xf32>
    %198 = arith.maximumf %192, %196 : vector<8x1024xf32>
    %c34_i32 = arith.constant 34 : i32
    %c8_i32_67 = arith.constant 8 : i32
    %199 = arith.muli %c34_i32, %c8_i32_67 : i32
    %200 = tpu.assume_multiple %199, 8 : i32
    %201 = arith.index_cast %200 : i32 to index
    %c0_68 = arith.constant 0 : index
    %202 = vector.load %arg2[%201, %c0_68] : memref<320x1024xf32, #tpu.memory_space<vmem>>, vector<8x1024xf32>
    %203 = arith.minimumf %197, %202 : vector<8x1024xf32>
    %204 = arith.maximumf %198, %202 : vector<8x1024xf32>
    %c35_i32 = arith.constant 35 : i32
    %c8_i32_69 = arith.constant 8 : i32
    %205 = arith.muli %c35_i32, %c8_i32_69 : i32
    %206 = tpu.assume_multiple %205, 8 : i32
    %207 = arith.index_cast %206 : i32 to index
    %c0_70 = arith.constant 0 : index
    %208 = vector.load %arg2[%207, %c0_70] : memref<320x1024xf32, #tpu.memory_space<vmem>>, vector<8x1024xf32>
    %209 = arith.minimumf %203, %208 : vector<8x1024xf32>
    %210 = arith.maximumf %204, %208 : vector<8x1024xf32>
    %c36_i32 = arith.constant 36 : i32
    %c8_i32_71 = arith.constant 8 : i32
    %211 = arith.muli %c36_i32, %c8_i32_71 : i32
    %212 = tpu.assume_multiple %211, 8 : i32
    %213 = arith.index_cast %212 : i32 to index
    %c0_72 = arith.constant 0 : index
    %214 = vector.load %arg2[%213, %c0_72] : memref<320x1024xf32, #tpu.memory_space<vmem>>, vector<8x1024xf32>
    %215 = arith.minimumf %209, %214 : vector<8x1024xf32>
    %216 = arith.maximumf %210, %214 : vector<8x1024xf32>
    %c37_i32 = arith.constant 37 : i32
    %c8_i32_73 = arith.constant 8 : i32
    %217 = arith.muli %c37_i32, %c8_i32_73 : i32
    %218 = tpu.assume_multiple %217, 8 : i32
    %219 = arith.index_cast %218 : i32 to index
    %c0_74 = arith.constant 0 : index
    %220 = vector.load %arg2[%219, %c0_74] : memref<320x1024xf32, #tpu.memory_space<vmem>>, vector<8x1024xf32>
    %221 = arith.minimumf %215, %220 : vector<8x1024xf32>
    %222 = arith.maximumf %216, %220 : vector<8x1024xf32>
    %c38_i32 = arith.constant 38 : i32
    %c8_i32_75 = arith.constant 8 : i32
    %223 = arith.muli %c38_i32, %c8_i32_75 : i32
    %224 = tpu.assume_multiple %223, 8 : i32
    %225 = arith.index_cast %224 : i32 to index
    %c0_76 = arith.constant 0 : index
    %226 = vector.load %arg2[%225, %c0_76] : memref<320x1024xf32, #tpu.memory_space<vmem>>, vector<8x1024xf32>
    %227 = arith.minimumf %221, %226 : vector<8x1024xf32>
    %228 = arith.maximumf %222, %226 : vector<8x1024xf32>
    %c39_i32 = arith.constant 39 : i32
    %c8_i32_77 = arith.constant 8 : i32
    %229 = arith.muli %c39_i32, %c8_i32_77 : i32
    %230 = tpu.assume_multiple %229, 8 : i32
    %231 = arith.index_cast %230 : i32 to index
    %c0_78 = arith.constant 0 : index
    %232 = vector.load %arg2[%231, %c0_78] : memref<320x1024xf32, #tpu.memory_space<vmem>>, vector<8x1024xf32>
    %233 = arith.minimumf %227, %232 : vector<8x1024xf32>
    %234 = arith.maximumf %228, %232 : vector<8x1024xf32>
    %c39_i32_79 = arith.constant 39 : i32
    %c0_i32 = arith.constant 0 : i32
    %235 = arith.cmpi eq, %arg1, %c0_i32 : i32
    %236 = arith.extui %235 : i1 to i32
    %c0_i32_80 = arith.constant 0 : i32
    %237 = arith.cmpi ne, %236, %c0_i32_80 : i32
    scf.if %237 {
      %c0_85 = arith.constant 0 : index
      %c0_86 = arith.constant 0 : index
      %244 = vector.load %arg5[%c0_85, %c0_86] : memref<8x1024xf32, #tpu.memory_space<vmem>>, vector<8x1024xf32>
      tpu.vector_store %arg5[%c0_85, %c0_86], %233 {strides = array<i32>} : memref<8x1024xf32, #tpu.memory_space<vmem>>, vector<8x1024xf32>,
      %c0_87 = arith.constant 0 : index
      %c0_88 = arith.constant 0 : index
      %245 = vector.load %arg6[%c0_87, %c0_88] : memref<8x1024xf32, #tpu.memory_space<vmem>>, vector<8x1024xf32>
      tpu.vector_store %arg6[%c0_87, %c0_88], %234 {strides = array<i32>} : memref<8x1024xf32, #tpu.memory_space<vmem>>, vector<8x1024xf32>,
    } else {
    }
    %c0_i32_81 = arith.constant 0 : i32
    %238 = arith.cmpi sgt, %arg1, %c0_i32_81 : i32
    %239 = arith.extui %238 : i1 to i32
    %c0_i32_82 = arith.constant 0 : i32
    %240 = arith.cmpi ne, %239, %c0_i32_82 : i32
    scf.if %240 {
      %c0_85 = arith.constant 0 : index
      %c0_86 = arith.constant 0 : index
      %244 = vector.load %arg5[%c0_85, %c0_86] : memref<8x1024xf32, #tpu.memory_space<vmem>>, vector<8x1024xf32>
      %245 = arith.minimumf %244, %233 : vector<8x1024xf32>
      %c0_87 = arith.constant 0 : index
      %c0_88 = arith.constant 0 : index
      %246 = vector.load %arg5[%c0_87, %c0_88] : memref<8x1024xf32, #tpu.memory_space<vmem>>, vector<8x1024xf32>
      tpu.vector_store %arg5[%c0_87, %c0_88], %245 {strides = array<i32>} : memref<8x1024xf32, #tpu.memory_space<vmem>>, vector<8x1024xf32>,
      %c0_89 = arith.constant 0 : index
      %c0_90 = arith.constant 0 : index
      %247 = vector.load %arg6[%c0_89, %c0_90] : memref<8x1024xf32, #tpu.memory_space<vmem>>, vector<8x1024xf32>
      %248 = arith.maximumf %247, %234 : vector<8x1024xf32>
      %c0_91 = arith.constant 0 : index
      %c0_92 = arith.constant 0 : index
      %249 = vector.load %arg6[%c0_91, %c0_92] : memref<8x1024xf32, #tpu.memory_space<vmem>>, vector<8x1024xf32>
      tpu.vector_store %arg6[%c0_91, %c0_92], %248 {strides = array<i32>} : memref<8x1024xf32, #tpu.memory_space<vmem>>, vector<8x1024xf32>,
    } else {
    }
    %c3_i32_83 = arith.constant 3 : i32
    %241 = arith.cmpi eq, %arg1, %c3_i32_83 : i32
    %242 = arith.extui %241 : i1 to i32
    %c0_i32_84 = arith.constant 0 : i32
    %243 = arith.cmpi ne, %242, %c0_i32_84 : i32
    scf.if %243 {
      %c0_85 = arith.constant 0 : index
      %c0_86 = arith.constant 0 : index
      %244 = vector.load %arg5[%c0_85, %c0_86] : memref<8x1024xf32, #tpu.memory_space<vmem>>, vector<8x1024xf32>
      %245 = vector.shape_cast %244 : vector<8x1024xf32> to vector<1x8x1024xf32>
      %cst = arith.constant dense<0x7F800000> : vector<1xf32>
      %246 = vector.multi_reduction <minimumf>, %245, %cst [1, 2] : vector<1x8x1024xf32> to vector<1xf32>
      %247 = vector.shape_cast %246 : vector<1xf32> to vector<1x1x1xf32>
      %248 = vector.extract %247[0, 0, 0] : f32 from vector<1x1x1xf32>
      %249 = vector.broadcast %248 : f32 to vector<8x128xf32>
      %c0_87 = arith.constant 0 : index
      %c0_88 = arith.constant 0 : index
      %250 = vector.load %arg3[%c0_87, %c0_88] : memref<8x128xf32, #tpu.memory_space<vmem>>, vector<8x128xf32>
      tpu.vector_store %arg3[%c0_87, %c0_88], %249 {strides = array<i32>} : memref<8x128xf32, #tpu.memory_space<vmem>>, vector<8x128xf32>,
      %c0_89 = arith.constant 0 : index
      %c0_90 = arith.constant 0 : index
      %251 = vector.load %arg6[%c0_89, %c0_90] : memref<8x1024xf32, #tpu.memory_space<vmem>>, vector<8x1024xf32>
      %252 = vector.shape_cast %251 : vector<8x1024xf32> to vector<1x8x1024xf32>
      %cst_91 = arith.constant dense<0xFF800000> : vector<1xf32>
      %253 = vector.multi_reduction <maximumf>, %252, %cst_91 [1, 2] : vector<1x8x1024xf32> to vector<1xf32>
      %254 = vector.shape_cast %253 : vector<1xf32> to vector<1x1x1xf32>
      %255 = vector.extract %254[0, 0, 0] : f32 from vector<1x1x1xf32>
      %256 = vector.broadcast %255 : f32 to vector<8x128xf32>
      %c0_92 = arith.constant 0 : index
      %c0_93 = arith.constant 0 : index
      %257 = vector.load %arg4[%c0_92, %c0_93] : memref<8x128xf32, #tpu.memory_space<vmem>>, vector<8x128xf32>
      tpu.vector_store %arg4[%c0_92, %c0_93], %256 {strides = array<i32>} : memref<8x128xf32, #tpu.memory_space<vmem>>, vector<8x128xf32>,
    } else {
    }
    return
  }
  func.func @transform_0(%arg0: i32, %arg1: i32) -> (i32, i32) {
    %c0_i32 = arith.constant 0 : i32
    return %arg0, %arg1 : i32, i32
  }
  func.func @transform_1(%arg0: i32, %arg1: i32) -> (i32, i32) {
    %c0_i32 = arith.constant 0 : i32
    %c0_i32_0 = arith.constant 0 : i32
    return %arg0, %c0_i32 : i32, i32
  }
  func.func @transform_2(%arg0: i32, %arg1: i32) -> (i32, i32) {
    %c0_i32 = arith.constant 0 : i32
    %c0_i32_0 = arith.constant 0 : i32
    return %arg0, %c0_i32 : i32, i32
  }
}

</mosaic_0001>

<bundles_post_ra>
// kernel: _minmax_reduce.1
= control target key start
LH: loop header
LB: loop body
LE: loop exit
PB: predicated region body
PF: predicated region fallthrough
CT: control target
= control target key end

     0   :  { %8 = vsyncpa [#allocation5], 0  ;;  %s2576_s0 = inlined_call_operand.hbm [shape: f32[640,4096], index: 0, kind: input, shape index: {}]   ;;  %s2577_s1 = inlined_call_operand.vmem [shape: f32[16,128], index: 1, kind: output, shape index: {0}]   ;;  %s2578_s2 = inlined_call_operand.vmem [shape: f32[16,128], index: 2, kind: output, shape index: {1}]  }
   0x1   :  { %10 = vsyncpa [#allocation5 + $0x1], 0  ;;  %s2055_s9 = smov 0   ;;  %s2057_s10 = smov 0  }
   0x2   :  { %s2059_s11 = smov 0   ;;  %s2061_s12 = smov 0  }
   0x3   :  { %s2063_s13 = smov 0   ;;  %s2065_s14 = smov 0  }
   0x4   :  { %s2067_s15 = smov 0   ;;  %s2069_s16 = smov 0  }
   0x5 LB: > { %s1530_s17 = sadd.s32 4294967295, %s2034_s16   ;;  %s25_s18 = sadd.s32 1, %s2026_s14  ;;  %s2034_s16 = sphi %s2069_s16, %s16_s16   ;;  %s2030_s15 = sphi %s2067_s15, %s2588_s15   ;;  %s2026_s14 = sphi %s2065_s14, %s2587_s14   ;;  %s2022_s13 = sphi %s2063_s13, %s2586_s13   ;;  %s2018_s12 = sphi %s2061_s12, %s2585_s12   ;;  %s2014_s11 = sphi %s2059_s11, %s2584_s11   ;;  %s2010_s10 = sphi %s2057_s10, %s2583_s10   ;;  %s2006_s9 = sphi %s2055_s9, %s2582_s9  }
   0x6   : > { %p26_p0 = scmp.ge.s32.totalorder %s25_s18, 4  ;;  %s28_s19 = sadd.s32 1, %s2030_s15 }
   0x7   : > { %s37_s20 = sadd.s32 1, %s2014_s11  ;;  %p44_p1 = scmp.ne.s32.totalorder %s2014_s11, %s2010_s10 }
   0x8   : > { %s2590_s18 = smov (%p26_p0, %s25_s18), 0  ;;  %s2592_s19 = smov (!%p26_p0, %s28_s19), %s2030_s15 }
   0x9   : > { %s33_s21 = ssub.s32 %s2026_s14, %s2590_s18  ;;  %p45_p2 = scmp.eq.s32.totalorder %s2034_s16, 0 }
   0xa   : > { %p30_p3 = scmp.ge.s32.totalorder %s2592_s19, 2  ;;  %p50_p4 = scmp.ne.s32.totalorder %s2010_s10, %s2006_s9 }
   0xb   : > { %p2106_p5 = por %p45_p2, %p44_p1  ;;  %p51_p6 = scmp.eq.s32.totalorder %s1530_s17, 0 }
   0xc   : > { %s2594_s19 = smov (%p30_p3, %s2592_s19), 0  ;;  %p1870_p8 = scmp.lt.s32.totalorder %s2034_s16, 8 }
   0xd   : > { %p2112_p7 = por %p51_p6, %p50_p4  ;;  %s32_s24 = ssub.s32 %s2030_s15, %s2594_s19 }
   0xe   : > { %s34_s25 = sor.u32 %s33_s21, %s32_s24  ;;  %s126_s26 = sand.u32 1, %s2014_s11  }
   0xf   : > { %p35_p9 = scmp.eq.s32.totalorder %s34_s25, 0  ;;  %s1858_s27 = smul.u32 2560, %s126_s26 }
  0x10   : > { %s1534_s28 = sshll.u32 %s2026_s14, 3  ;;  %s1857_s30 = smul.u32 1280, %s2030_s15 }
  0x11   : > { %s2122_s29 = scalar_select %p35_p9, %s2014_s11, %s37_s20  }
  0x12   : > { %s130_s3 = scalar_lea.vmem [#allocation4], %s1858_s27  ;;  %p2127_p10 = pnand %p1870_p8, %p2106_p5 }
  0x13   : > { %s140_s4 = sshll.u32 %s130_s3, 4  ;;  %s137_s6 = sadd.s32 %s1857_s30, %s1534_s28  ;;  %s2131_s4 = int_to_ptr.vmem [resolvable:$true] %s140_s4 }
  0x14   : > { %s1536_s7 = sshll.u32 %s137_s6, 7  ;;  %s2138_s20 = scalar_lea.sflag [#allocation5], %s126_s26 }
  0x15   : > { %s2136_s17 = scalar_lea.hbm %s2576_s0, %s1536_s7  ;;  %p1940_p12 = pneg %p2127_p10 }
  0x16   : > { %s1938_s21 = scalar_lea.hbm %s2136_s17, 40960  ;;  %s1943_s25 = scalar_lea.hbm %s2576_s0, 327680 }
  0x17   : > { %p1939_p11 = scmp.ne.s32.totalorder %s2136_s17, %s1938_s21  ;;  %p1944_p1 = scmp.lt.u32.totalorder %s2136_s17, %s2576_s0 }
  0x18   : > { %p1945_p2 = scmp.lt.u32.totalorder %s1943_s25, %s1938_s21  ;;  %p1947_p4 = scmp.lt.u32.totalorder %s1938_s21, %s2136_s17 }
  0x19   : > { %p1941_p13 = pnand %p1940_p12, %p1939_p11 }
  0x1a   : > { %p1946_p3 = por %p1945_p2, %p1944_p1 }
  0x1b   : > { %p1942_p0 = pneg %p1941_p13 }
  0x1c   : > { %p1948_p5 = por %p1947_p4, %p1946_p3 }
  0x1e   : > { %p1949_p6 = pnand %p1948_p5, %p1942_p0 }
  0x20   : > { %1952 = shalt.err (!%p1949_p6)
}
  0x21   : > { %s1953_s26 = scalar_lea.vmem %s2131_s4, 40960  ;;  %s2036_s30 = smov [#allocation4]  }
  0x22   : > { %p1954_p8 = scmp.ne.s32.totalorder %s2131_s4, %s1953_s26  ;;  %s1958_s3 = sshll.u32 %s2036_s30, 4  ;;  %s1959_s3 = int_to_ptr.vmem [resolvable:$false] %s1958_s3 }
  0x23   : > { %s1960_s6 = scalar_lea.vmem %s1959_s3, 81920  ;;  %p1961_p13 = scmp.lt.s32.totalorder %s2131_s4, %s1959_s3 }
  0x24   : > { %p1956_p9 = pnand %p1954_p8, %p1940_p12  ;;  %p1962_p1 = scmp.lt.s32.totalorder %s1960_s6, %s1953_s26 }
  0x26   : > { %p1957_p11 = pneg %p1956_p9  ;;  %p1963_p2 = por %p1962_p1, %p1961_p13 }
  0x28   : > { %p1964_p3 = pnand %p1963_p2, %p1957_p11 }
  0x2a   : > { %1967 = shalt.err (!%p1964_p3)
}
  0x2b   : > { %s2037_s7 = smov 4096   ;;  %s2038_s8 = smov 1024  }
  0x2c   : > { %s2039_s9 = smov 64   ;;  %p1537_p12 = scmp.ge.s32.totalorder %s2034_s16, 1 }
  0x2d   : > { %1869 = dma.hbm_to_vmem [thread:$0]  (!%p2127_p10), %s2136_s17, 40960, %s2131_s4, %s2138_s20, %s2037_s7, %s2038_s8, %s2039_s9  }
  0x2e   : > { %p148_p0 = scmp.lt.s32.totalorder %s2034_s16, 9 }
  0x30   : > { %p149_p4 = pnand %p1537_p12, %p148_p0 }
  0x31   : > { %s154_s21 = sand.u32 (!%p149_p4), 1, %s2010_s10  }
  0x32   : > { %152 = sbr.rel (%p149_p4) target bundleno = 462 (0x1ce), region = 24  ;;  %s155_s24 = scalar_lea.sflag (!%p149_p4), [#allocation5], %s154_s21 }
  0x33   : > { %s1859_s22 = smul.u32 (!%p149_p4), 2560, %s154_s21 }
  0x35   : > { %s2169_s25 = scalar_lea.vmem (!%p149_p4), [#allocation4], %s1859_s22 }
  0x39   : > { %2001 = dma.done.wait (%p2112_p7), %s155_s24, 40960  }
  0x3a   : > { %2003 = vsyncadd (%p2112_p7), %s155_s24, 4294926336  ;;  %p184_p10 = scmp.lt.s32.totalorder %s2022_s13, 1  ;;  %v192_v0 = vld [vmem:[%s2169_s25] sm:$0xff]  ;;  %v193_v1 = vld [vmem:[%s2169_s25 + $0x8] sm:$0xff]  ;;  %p1852_p7 = scmp.ne.s32.totalorder %s2018_s12, 0 }
  0x3b   : > { %v194_v2 = vld [vmem:[%s2169_s25 + $0x10] sm:$0xff]  ;;  %v195_v3 = vld [vmem:[%s2169_s25 + $0x18] sm:$0xff]  ;;  %v196_v4 = vld [vmem:[%s2169_s25 + $0x20] sm:$0xff] }
  0x3c   : > { %s2596_s13 = smov (!%p184_p10, %s2022_s13), 1  ;;  %v197_v5 = vld [vmem:[%s2169_s25 + $0x28] sm:$0xff]  ;;  %v198_v6 = vld [vmem:[%s2169_s25 + $0x30] sm:$0xff]  ;;  %v199_v7 = vld [vmem:[%s2169_s25 + $0x38] sm:$0xff] }
  0x3d   : > { %s1538_s4 = sshll.u32 %s2596_s13, 3  ;;  %v1540_v8 = vld [vmem:[%s2169_s25 + $0x40] sm:$0xff]  ;;  %v1541_v9 = vld [vmem:[%s2169_s25 + $0x48] sm:$0xff]  ;;  %v1542_v10 = vld [vmem:[%s2169_s25 + $0x50] sm:$0xff] }
  0x3e   : > { %s2180_s17 = scalar_lea.vmem %s2577_s1, %s1538_s4  ;;  %s2185_s28 = scalar_lea.vmem %s2578_s2, %s1538_s4  ;;  %v1543_v11 = vld [vmem:[%s2169_s25 + $0x58] sm:$0xff]  ;;  %v211_v12 = vmin.f32 %v192_v0, %v1540_v8  ;;  %v219_v13 = vmax.f32 %v192_v0, %v1540_v8  ;;  %v1544_v14 = vld [vmem:[%s2169_s25 + $0x60] sm:$0xff]  ;;  %v1545_v15 = vld [vmem:[%s2169_s25 + $0x68] sm:$0xff]  ;;  %v212_v17 = vmin.f32 %v193_v1, %v1541_v9  ;;  %v213_v18 = vmin.f32 %v194_v2, %v1542_v10 }
  0x3f   : > { %v1546_v16 = vld [vmem:[%s2169_s25 + $0x70] sm:$0xff]  ;;  %v214_v19 = vmin.f32 %v195_v3, %v1543_v11  ;;  %v220_v20 = vmax.f32 %v193_v1, %v1541_v9  ;;  %v1547_v21 = vld [vmem:[%s2169_s25 + $0x78] sm:$0xff]  ;;  %v215_v22 = vmin.f32 %v196_v4, %v1544_v14  ;;  %v216_v23 = vmin.f32 %v197_v5, %v1545_v15  ;;  %v1548_v26 = vld [vmem:[%s2169_s25 + $0x80] sm:$0xff] }
  0x40   : > { %v217_v24 = vmin.f32 %v198_v6, %v1546_v16  ;;  %v221_v25 = vmax.f32 %v194_v2, %v1542_v10  ;;  %v1549_v27 = vld [vmem:[%s2169_s25 + $0x88] sm:$0xff]  ;;  %v218_v28 = vmin.f32 %v199_v7, %v1547_v21  ;;  %v222_v29 = vmax.f32 %v195_v3, %v1543_v11  ;;  %v1550_v32 = vld [vmem:[%s2169_s25 + $0x90] sm:$0xff]  ;;  %v1551_v33 = vld [vmem:[%s2169_s25 + $0x98] sm:$0xff] }
  0x41   : > { %v223_v30 = vmax.f32 %v196_v4, %v1544_v14  ;;  %v224_v31 = vmax.f32 %v197_v5, %v1545_v15  ;;  %v1552_v34 = vld [vmem:[%s2169_s25 + $0xa0] sm:$0xff]  ;;  %v225_v35 = vmax.f32 %v198_v6, %v1546_v16  ;;  %v226_v36 = vmax.f32 %v199_v7, %v1547_v21  ;;  %v1553_v37 = vld [vmem:[%s2169_s25 + $0xa8] sm:$0xff]  ;;  %v1554_v38 = vld [vmem:[%s2169_s25 + $0xb0] sm:$0xff] }
  0x42   : > { %v1555_v39 = vld [vmem:[%s2169_s25 + $0xb8] sm:$0xff]  ;;  %v238_v40 = vmin.f32 %v211_v12, %v1548_v26  ;;  %v239_v41 = vmin.f32 %v212_v17, %v1549_v27  ;;  %v240_v42 = vmin.f32 %v213_v18, %v1550_v32  ;;  %v241_v43 = vmin.f32 %v214_v19, %v1551_v33  ;;  %v1556_v46 = vld [vmem:[%s2169_s25 + $0xc0] sm:$0xff]  ;;  %v1557_v47 = vld [vmem:[%s2169_s25 + $0xc8] sm:$0xff] }
  0x43   : > { %v242_v44 = vmin.f32 %v215_v22, %v1552_v34  ;;  %v243_v45 = vmin.f32 %v216_v23, %v1553_v37  ;;  %v1558_v48 = vld [vmem:[%s2169_s25 + $0xd0] sm:$0xff]  ;;  %v244_v49 = vmin.f32 %v217_v24, %v1554_v38  ;;  %v245_v50 = vmin.f32 %v218_v28, %v1555_v39  ;;  %v1559_v53 = vld [vmem:[%s2169_s25 + $0xd8] sm:$0xff]  ;;  %v1560_v54 = vld [vmem:[%s2169_s25 + $0xe0] sm:$0xff] }
  0x44   : > { %v246_v51 = vmax.f32 %v219_v13, %v1548_v26  ;;  %v247_v52 = vmax.f32 %v220_v20, %v1549_v27  ;;  %v1561_v55 = vld [vmem:[%s2169_s25 + $0xe8] sm:$0xff]  ;;  %v248_v56 = vmax.f32 %v221_v25, %v1550_v32  ;;  %v249_v57 = vmax.f32 %v222_v29, %v1551_v33  ;;  %v1562_v60 = vld [vmem:[%s2169_s25 + $0xf0] sm:$0xff]  ;;  %v1563_v61 = vld [vmem:[%s2169_s25 + $0xf8] sm:$0xff] }
  0x45   : > { %v250_v58 = vmax.f32 %v223_v30, %v1552_v34  ;;  %v251_v59 = vmax.f32 %v224_v31, %v1553_v37  ;;  %v252_v62 = vmax.f32 %v225_v35, %v1554_v38  ;;  %v253_v63 = vmax.f32 %v226_v36, %v1555_v39  ;;  %v1564_v6 = vld [vmem:[%s2169_s25 + $0x100] sm:$0xff]  ;;  %v1565_v7 = vld [vmem:[%s2169_s25 + $0x108] sm:$0xff]  ;;  %v1566_v8 = vld [vmem:[%s2169_s25 + $0x110] sm:$0xff] }
  0x46   : > { %v265_v0 = vmin.f32 %v238_v40, %v1556_v46  ;;  %v266_v1 = vmin.f32 %v239_v41, %v1557_v47  ;;  %v267_v2 = vmin.f32 %v240_v42, %v1558_v48  ;;  %v268_v3 = vmin.f32 %v241_v43, %v1559_v53  ;;  %v1567_v13 = vld [vmem:[%s2169_s25 + $0x118] sm:$0xff]  ;;  %v1568_v14 = vld [vmem:[%s2169_s25 + $0x120] sm:$0xff]  ;;  %v1569_v15 = vld [vmem:[%s2169_s25 + $0x128] sm:$0xff] }
  0x47   : > { %v269_v4 = vmin.f32 %v242_v44, %v1560_v54  ;;  %v270_v5 = vmin.f32 %v243_v45, %v1561_v55  ;;  %v271_v9 = vmin.f32 %v244_v49, %v1562_v60  ;;  %v272_v10 = vmin.f32 %v245_v50, %v1563_v61  ;;  %v1570_v20 = vld [vmem:[%s2169_s25 + $0x130] sm:$0xff]  ;;  %v1571_v21 = vld [vmem:[%s2169_s25 + $0x138] sm:$0xff]  ;;  %v1572_v30 = vld [vmem:[%s2169_s25 + $0x140] sm:$0xff] }
  0x48   : > { %v273_v11 = vmax.f32 %v246_v51, %v1556_v46  ;;  %v274_v12 = vmax.f32 %v247_v52, %v1557_v47  ;;  %v275_v16 = vmax.f32 %v248_v56, %v1558_v48  ;;  %v276_v17 = vmax.f32 %v249_v57, %v1559_v53  ;;  %v1573_v31 = vld [vmem:[%s2169_s25 + $0x148] sm:$0xff]  ;;  %v1574_v32 = vld [vmem:[%s2169_s25 + $0x150] sm:$0xff]  ;;  %v1575_v37 = vld [vmem:[%s2169_s25 + $0x158] sm:$0xff] }
  0x49   : > { %v277_v18 = vmax.f32 %v250_v58, %v1560_v54  ;;  %v278_v19 = vmax.f32 %v251_v59, %v1561_v55  ;;  %v279_v22 = vmax.f32 %v252_v62, %v1562_v60  ;;  %v280_v23 = vmax.f32 %v253_v63, %v1563_v61  ;;  %v1576_v38 = vld [vmem:[%s2169_s25 + $0x160] sm:$0xff]  ;;  %v1577_v39 = vld [vmem:[%s2169_s25 + $0x168] sm:$0xff]  ;;  %v1578_v44 = vld [vmem:[%s2169_s25 + $0x170] sm:$0xff] }
  0x4a   : > { %v292_v24 = vmin.f32 %v265_v0, %v1564_v6  ;;  %v293_v25 = vmin.f32 %v266_v1, %v1565_v7  ;;  %v294_v26 = vmin.f32 %v267_v2, %v1566_v8  ;;  %v295_v27 = vmin.f32 %v268_v3, %v1567_v13  ;;  %v1579_v45 = vld [vmem:[%s2169_s25 + $0x178] sm:$0xff]  ;;  %v1580_v54 = vld [vmem:[%s2169_s25 + $0x180] sm:$0xff]  ;;  %v1581_v55 = vld [vmem:[%s2169_s25 + $0x188] sm:$0xff] }
  0x4b   : > { %v296_v28 = vmin.f32 %v269_v4, %v1568_v14  ;;  %v297_v29 = vmin.f32 %v270_v5, %v1569_v15  ;;  %v298_v33 = vmin.f32 %v271_v9, %v1570_v20  ;;  %v299_v34 = vmin.f32 %v272_v10, %v1571_v21  ;;  %v1582_v56 = vld [vmem:[%s2169_s25 + $0x190] sm:$0xff]  ;;  %v1583_v61 = vld [vmem:[%s2169_s25 + $0x198] sm:$0xff]  ;;  %v1584_v62 = vld [vmem:[%s2169_s25 + $0x1a0] sm:$0xff] }
  0x4c   : > { %v300_v35 = vmax.f32 %v273_v11, %v1564_v6  ;;  %v301_v36 = vmax.f32 %v274_v12, %v1565_v7  ;;  %v302_v40 = vmax.f32 %v275_v16, %v1566_v8  ;;  %v303_v41 = vmax.f32 %v276_v17, %v1567_v13  ;;  %v1585_v63 = vld [vmem:[%s2169_s25 + $0x1a8] sm:$0xff]  ;;  %v1586_v4 = vld [vmem:[%s2169_s25 + $0x1b0] sm:$0xff]  ;;  %v1587_v5 = vld [vmem:[%s2169_s25 + $0x1b8] sm:$0xff] }
  0x4d   : > { %v304_v42 = vmax.f32 %v277_v18, %v1568_v14  ;;  %v305_v43 = vmax.f32 %v278_v19, %v1569_v15  ;;  %v306_v46 = vmax.f32 %v279_v22, %v1570_v20  ;;  %v307_v47 = vmax.f32 %v280_v23, %v1571_v21  ;;  %v1588_v14 = vld [vmem:[%s2169_s25 + $0x1c0] sm:$0xff]  ;;  %v1589_v15 = vld [vmem:[%s2169_s25 + $0x1c8] sm:$0xff]  ;;  %v1590_v16 = vld [vmem:[%s2169_s25 + $0x1d0] sm:$0xff] }
  0x4e   : > { %v319_v48 = vmin.f32 %v292_v24, %v1572_v30  ;;  %v320_v49 = vmin.f32 %v293_v25, %v1573_v31  ;;  %v321_v50 = vmin.f32 %v294_v26, %v1574_v32  ;;  %v322_v51 = vmin.f32 %v295_v27, %v1575_v37  ;;  %v1591_v21 = vld [vmem:[%s2169_s25 + $0x1d8] sm:$0xff]  ;;  %v1592_v22 = vld [vmem:[%s2169_s25 + $0x1e0] sm:$0xff]  ;;  %v1593_v23 = vld [vmem:[%s2169_s25 + $0x1e8] sm:$0xff] }
  0x4f   : > { %v323_v52 = vmin.f32 %v296_v28, %v1576_v38  ;;  %v324_v53 = vmin.f32 %v297_v29, %v1577_v39  ;;  %v325_v57 = vmin.f32 %v298_v33, %v1578_v44  ;;  %v326_v58 = vmin.f32 %v299_v34, %v1579_v45  ;;  %v1594_v28 = vld [vmem:[%s2169_s25 + $0x1f0] sm:$0xff]  ;;  %v1595_v29 = vld [vmem:[%s2169_s25 + $0x1f8] sm:$0xff] }
  0x50   : > { %v327_v59 = vmax.f32 %v300_v35, %v1572_v30  ;;  %v328_v60 = vmax.f32 %v301_v36, %v1573_v31  ;;  %v329_v0 = vmax.f32 %v302_v40, %v1574_v32  ;;  %v330_v1 = vmax.f32 %v303_v41, %v1575_v37  ;;  %v1598_v40 = vld [vmem:[%s2169_s25 + $0x210] sm:$0xff] }
  0x51   : > { %v331_v2 = vmax.f32 %v304_v42, %v1576_v38  ;;  %v332_v3 = vmax.f32 %v305_v43, %v1577_v39  ;;  %v333_v6 = vmax.f32 %v306_v46, %v1578_v44  ;;  %v334_v7 = vmax.f32 %v307_v47, %v1579_v45  ;;  %v1596_v38 = vld [vmem:[%s2169_s25 + $0x200] sm:$0xff]  ;;  %v1597_v39 = vld [vmem:[%s2169_s25 + $0x208] sm:$0xff]  ;;  %v1599_v45 = vld [vmem:[%s2169_s25 + $0x218] sm:$0xff] }
  0x52   : > { %v346_v8 = vmin.f32 %v319_v48, %v1580_v54  ;;  %v347_v9 = vmin.f32 %v320_v49, %v1581_v55  ;;  %v348_v10 = vmin.f32 %v321_v50, %v1582_v56  ;;  %v349_v11 = vmin.f32 %v322_v51, %v1583_v61  ;;  %v1600_v46 = vld [vmem:[%s2169_s25 + $0x220] sm:$0xff]  ;;  %v1601_v47 = vld [vmem:[%s2169_s25 + $0x228] sm:$0xff] }
  0x53   : > { %v350_v12 = vmin.f32 %v323_v52, %v1584_v62  ;;  %v351_v13 = vmin.f32 %v324_v53, %v1585_v63  ;;  %v352_v17 = vmin.f32 %v325_v57, %v1586_v4  ;;  %v353_v18 = vmin.f32 %v326_v58, %v1587_v5  ;;  %v1602_v52 = vld [vmem:[%s2169_s25 + $0x230] sm:$0xff]  ;;  %v1603_v53 = vld [vmem:[%s2169_s25 + $0x238] sm:$0xff] }
  0x54   : > { %v354_v19 = vmax.f32 %v327_v59, %v1580_v54  ;;  %v355_v20 = vmax.f32 %v328_v60, %v1581_v55  ;;  %v356_v24 = vmax.f32 %v329_v0, %v1582_v56  ;;  %v357_v25 = vmax.f32 %v330_v1, %v1583_v61  ;;  %v1606_v0 = vld [vmem:[%s2169_s25 + $0x250] sm:$0xff] }
  0x55   : > { %v358_v26 = vmax.f32 %v331_v2, %v1584_v62  ;;  %v359_v27 = vmax.f32 %v332_v3, %v1585_v63  ;;  %v360_v30 = vmax.f32 %v333_v6, %v1586_v4  ;;  %v361_v31 = vmax.f32 %v334_v7, %v1587_v5  ;;  %v1604_v62 = vld [vmem:[%s2169_s25 + $0x240] sm:$0xff]  ;;  %v1605_v63 = vld [vmem:[%s2169_s25 + $0x248] sm:$0xff]  ;;  %v1607_v5 = vld [vmem:[%s2169_s25 + $0x258] sm:$0xff] }
  0x56   : > { %v373_v32 = vmin.f32 %v346_v8, %v1588_v14  ;;  %v374_v33 = vmin.f32 %v347_v9, %v1589_v15  ;;  %v375_v34 = vmin.f32 %v348_v10, %v1590_v16  ;;  %v376_v35 = vmin.f32 %v349_v11, %v1591_v21  ;;  %v1608_v6 = vld [vmem:[%s2169_s25 + $0x260] sm:$0xff]  ;;  %v1609_v7 = vld [vmem:[%s2169_s25 + $0x268] sm:$0xff] }
  0x57   : > { %v377_v36 = vmin.f32 %v350_v12, %v1592_v22  ;;  %v378_v37 = vmin.f32 %v351_v13, %v1593_v23  ;;  %v379_v41 = vmin.f32 %v352_v17, %v1594_v28  ;;  %v380_v42 = vmin.f32 %v353_v18, %v1595_v29  ;;  %v1610_v12 = vld [vmem:[%s2169_s25 + $0x270] sm:$0xff]  ;;  %v1611_v13 = vld [vmem:[%s2169_s25 + $0x278] sm:$0xff] }
  0x58   : > { %v381_v43 = vmax.f32 %v354_v19, %v1588_v14  ;;  %v382_v44 = vmax.f32 %v355_v20, %v1589_v15  ;;  %v383_v48 = vmax.f32 %v356_v24, %v1590_v16  ;;  %v384_v49 = vmax.f32 %v357_v25, %v1591_v21  ;;  %v1614_v24 = vld [vmem:[%s2169_s25 + $0x290] sm:$0xff] }
  0x59   : > { %v385_v50 = vmax.f32 %v358_v26, %v1592_v22  ;;  %v386_v51 = vmax.f32 %v359_v27, %v1593_v23  ;;  %v387_v54 = vmax.f32 %v360_v30, %v1594_v28  ;;  %v388_v55 = vmax.f32 %v361_v31, %v1595_v29  ;;  %v1612_v22 = vld [vmem:[%s2169_s25 + $0x280] sm:$0xff]  ;;  %v1613_v23 = vld [vmem:[%s2169_s25 + $0x288] sm:$0xff]  ;;  %v1615_v29 = vld [vmem:[%s2169_s25 + $0x298] sm:$0xff] }
  0x5a   : > { %v400_v56 = vmin.f32 %v373_v32, %v1596_v38  ;;  %v401_v57 = vmin.f32 %v374_v33, %v1597_v39  ;;  %v402_v58 = vmin.f32 %v375_v34, %v1598_v40  ;;  %v403_v59 = vmin.f32 %v376_v35, %v1599_v45  ;;  %v1616_v30 = vld [vmem:[%s2169_s25 + $0x2a0] sm:$0xff]  ;;  %v1617_v31 = vld [vmem:[%s2169_s25 + $0x2a8] sm:$0xff] }
  0x5b   : > { %v404_v60 = vmin.f32 %v377_v36, %v1600_v46  ;;  %v405_v61 = vmin.f32 %v378_v37, %v1601_v47  ;;  %v406_v1 = vmin.f32 %v379_v41, %v1602_v52  ;;  %v407_v2 = vmin.f32 %v380_v42, %v1603_v53  ;;  %v1618_v36 = vld [vmem:[%s2169_s25 + $0x2b0] sm:$0xff]  ;;  %v1619_v37 = vld [vmem:[%s2169_s25 + $0x2b8] sm:$0xff] }
  0x5c   : > { %v408_v3 = vmax.f32 %v381_v43, %v1596_v38  ;;  %v409_v4 = vmax.f32 %v382_v44, %v1597_v39  ;;  %v410_v8 = vmax.f32 %v383_v48, %v1598_v40  ;;  %v411_v9 = vmax.f32 %v384_v49, %v1599_v45  ;;  %v1622_v48 = vld [vmem:[%s2169_s25 + $0x2d0] sm:$0xff] }
  0x5d   : > { %v412_v10 = vmax.f32 %v385_v50, %v1600_v46  ;;  %v413_v11 = vmax.f32 %v386_v51, %v1601_v47  ;;  %v414_v14 = vmax.f32 %v387_v54, %v1602_v52  ;;  %v415_v15 = vmax.f32 %v388_v55, %v1603_v53  ;;  %v1620_v46 = vld [vmem:[%s2169_s25 + $0x2c0] sm:$0xff]  ;;  %v1621_v47 = vld [vmem:[%s2169_s25 + $0x2c8] sm:$0xff]  ;;  %v1623_v53 = vld [vmem:[%s2169_s25 + $0x2d8] sm:$0xff] }
  0x5e   : > { %v427_v16 = vmin.f32 %v400_v56, %v1604_v62  ;;  %v428_v17 = vmin.f32 %v401_v57, %v1605_v63  ;;  %v429_v18 = vmin.f32 %v402_v58, %v1606_v0  ;;  %v430_v19 = vmin.f32 %v403_v59, %v1607_v5  ;;  %v1624_v54 = vld [vmem:[%s2169_s25 + $0x2e0] sm:$0xff]  ;;  %v1625_v55 = vld [vmem:[%s2169_s25 + $0x2e8] sm:$0xff] }
  0x5f   : > { %v431_v20 = vmin.f32 %v404_v60, %v1608_v6  ;;  %v432_v21 = vmin.f32 %v405_v61, %v1609_v7  ;;  %v433_v25 = vmin.f32 %v406_v1, %v1610_v12  ;;  %v434_v26 = vmin.f32 %v407_v2, %v1611_v13  ;;  %v1626_v60 = vld [vmem:[%s2169_s25 + $0x2f0] sm:$0xff]  ;;  %v1627_v61 = vld [vmem:[%s2169_s25 + $0x2f8] sm:$0xff] }
  0x60   : > { %v435_v27 = vmax.f32 %v408_v3, %v1604_v62  ;;  %v436_v28 = vmax.f32 %v409_v4, %v1605_v63  ;;  %v437_v32 = vmax.f32 %v410_v8, %v1606_v0  ;;  %v438_v33 = vmax.f32 %v411_v9, %v1607_v5  ;;  %v1630_v8 = vld [vmem:[%s2169_s25 + $0x310] sm:$0xff] }
  0x61   : > { %v439_v34 = vmax.f32 %v412_v10, %v1608_v6  ;;  %v440_v35 = vmax.f32 %v413_v11, %v1609_v7  ;;  %v441_v38 = vmax.f32 %v414_v14, %v1610_v12  ;;  %v442_v39 = vmax.f32 %v415_v15, %v1611_v13  ;;  %v1628_v6 = vld [vmem:[%s2169_s25 + $0x300] sm:$0xff]  ;;  %v1629_v7 = vld [vmem:[%s2169_s25 + $0x308] sm:$0xff]  ;;  %v1631_v13 = vld [vmem:[%s2169_s25 + $0x318] sm:$0xff] }
  0x62   : > { %v454_v40 = vmin.f32 %v427_v16, %v1612_v22  ;;  %v455_v41 = vmin.f32 %v428_v17, %v1613_v23  ;;  %v456_v42 = vmin.f32 %v429_v18, %v1614_v24  ;;  %v457_v43 = vmin.f32 %v430_v19, %v1615_v29  ;;  %v1632_v14 = vld [vmem:[%s2169_s25 + $0x320] sm:$0xff]  ;;  %v1633_v15 = vld [vmem:[%s2169_s25 + $0x328] sm:$0xff] }
  0x63   : > { %v458_v44 = vmin.f32 %v431_v20, %v1616_v30  ;;  %v459_v45 = vmin.f32 %v432_v21, %v1617_v31  ;;  %v460_v49 = vmin.f32 %v433_v25, %v1618_v36  ;;  %v461_v50 = vmin.f32 %v434_v26, %v1619_v37  ;;  %v1634_v20 = vld [vmem:[%s2169_s25 + $0x330] sm:$0xff]  ;;  %v1635_v21 = vld [vmem:[%s2169_s25 + $0x338] sm:$0xff] }
  0x64   : > { %v462_v51 = vmax.f32 %v435_v27, %v1612_v22  ;;  %v463_v52 = vmax.f32 %v436_v28, %v1613_v23  ;;  %v464_v56 = vmax.f32 %v437_v32, %v1614_v24  ;;  %v465_v57 = vmax.f32 %v438_v33, %v1615_v29  ;;  %v1638_v32 = vld [vmem:[%s2169_s25 + $0x350] sm:$0xff] }
  0x65   : > { %v466_v58 = vmax.f32 %v439_v34, %v1616_v30  ;;  %v467_v59 = vmax.f32 %v440_v35, %v1617_v31  ;;  %v468_v62 = vmax.f32 %v441_v38, %v1618_v36  ;;  %v469_v63 = vmax.f32 %v442_v39, %v1619_v37  ;;  %v1636_v30 = vld [vmem:[%s2169_s25 + $0x340] sm:$0xff]  ;;  %v1637_v31 = vld [vmem:[%s2169_s25 + $0x348] sm:$0xff]  ;;  %v1639_v37 = vld [vmem:[%s2169_s25 + $0x358] sm:$0xff] }
  0x66   : > { %v481_v0 = vmin.f32 %v454_v40, %v1620_v46  ;;  %v482_v1 = vmin.f32 %v455_v41, %v1621_v47  ;;  %v483_v2 = vmin.f32 %v456_v42, %v1622_v48  ;;  %v484_v3 = vmin.f32 %v457_v43, %v1623_v53  ;;  %v1640_v38 = vld [vmem:[%s2169_s25 + $0x360] sm:$0xff]  ;;  %v1641_v39 = vld [vmem:[%s2169_s25 + $0x368] sm:$0xff] }
  0x67   : > { %v485_v4 = vmin.f32 %v458_v44, %v1624_v54  ;;  %v486_v5 = vmin.f32 %v459_v45, %v1625_v55  ;;  %v487_v9 = vmin.f32 %v460_v49, %v1626_v60  ;;  %v488_v10 = vmin.f32 %v461_v50, %v1627_v61  ;;  %v1642_v44 = vld [vmem:[%s2169_s25 + $0x370] sm:$0xff]  ;;  %v1643_v45 = vld [vmem:[%s2169_s25 + $0x378] sm:$0xff] }
  0x68   : > { %v489_v11 = vmax.f32 %v462_v51, %v1620_v46  ;;  %v490_v12 = vmax.f32 %v463_v52, %v1621_v47  ;;  %v491_v16 = vmax.f32 %v464_v56, %v1622_v48  ;;  %v492_v17 = vmax.f32 %v465_v57, %v1623_v53  ;;  %v1646_v56 = vld [vmem:[%s2169_s25 + $0x390] sm:$0xff] }
  0x69   : > { %v493_v18 = vmax.f32 %v466_v58, %v1624_v54  ;;  %v494_v19 = vmax.f32 %v467_v59, %v1625_v55  ;;  %v495_v22 = vmax.f32 %v468_v62, %v1626_v60  ;;  %v496_v23 = vmax.f32 %v469_v63, %v1627_v61  ;;  %v1644_v54 = vld [vmem:[%s2169_s25 + $0x380] sm:$0xff]  ;;  %v1645_v55 = vld [vmem:[%s2169_s25 + $0x388] sm:$0xff]  ;;  %v1647_v61 = vld [vmem:[%s2169_s25 + $0x398] sm:$0xff] }
  0x6a   : > { %v508_v24 = vmin.f32 %v481_v0, %v1628_v6  ;;  %v509_v25 = vmin.f32 %v482_v1, %v1629_v7  ;;  %v510_v26 = vmin.f32 %v483_v2, %v1630_v8  ;;  %v511_v27 = vmin.f32 %v484_v3, %v1631_v13  ;;  %v1648_v62 = vld [vmem:[%s2169_s25 + $0x3a0] sm:$0xff]  ;;  %v1649_v63 = vld [vmem:[%s2169_s25 + $0x3a8] sm:$0xff] }
  0x6b   : > { %v512_v28 = vmin.f32 %v485_v4, %v1632_v14  ;;  %v513_v29 = vmin.f32 %v486_v5, %v1633_v15  ;;  %v514_v33 = vmin.f32 %v487_v9, %v1634_v20  ;;  %v515_v34 = vmin.f32 %v488_v10, %v1635_v21  ;;  %v1650_v4 = vld [vmem:[%s2169_s25 + $0x3b0] sm:$0xff]  ;;  %v1651_v5 = vld [vmem:[%s2169_s25 + $0x3b8] sm:$0xff] }
  0x6c   : > { %v516_v35 = vmax.f32 %v489_v11, %v1628_v6  ;;  %v517_v36 = vmax.f32 %v490_v12, %v1629_v7  ;;  %v518_v40 = vmax.f32 %v491_v16, %v1630_v8  ;;  %v519_v41 = vmax.f32 %v492_v17, %v1631_v13  ;;  %v1654_v16 = vld [vmem:[%s2169_s25 + $0x3d0] sm:$0xff] }
  0x6d   : > { %v520_v42 = vmax.f32 %v493_v18, %v1632_v14  ;;  %v521_v43 = vmax.f32 %v494_v19, %v1633_v15  ;;  %v522_v46 = vmax.f32 %v495_v22, %v1634_v20  ;;  %v523_v47 = vmax.f32 %v496_v23, %v1635_v21  ;;  %v1652_v14 = vld [vmem:[%s2169_s25 + $0x3c0] sm:$0xff]  ;;  %v1653_v15 = vld [vmem:[%s2169_s25 + $0x3c8] sm:$0xff]  ;;  %v1655_v21 = vld [vmem:[%s2169_s25 + $0x3d8] sm:$0xff] }
  0x6e   : > { %v535_v48 = vmin.f32 %v508_v24, %v1636_v30  ;;  %v536_v49 = vmin.f32 %v509_v25, %v1637_v31  ;;  %v537_v50 = vmin.f32 %v510_v26, %v1638_v32  ;;  %v538_v51 = vmin.f32 %v511_v27, %v1639_v37  ;;  %v1656_v22 = vld [vmem:[%s2169_s25 + $0x3e0] sm:$0xff]  ;;  %v1657_v23 = vld [vmem:[%s2169_s25 + $0x3e8] sm:$0xff] }
  0x6f   : > { %v539_v52 = vmin.f32 %v512_v28, %v1640_v38  ;;  %v540_v53 = vmin.f32 %v513_v29, %v1641_v39  ;;  %v541_v57 = vmin.f32 %v514_v33, %v1642_v44  ;;  %v542_v58 = vmin.f32 %v515_v34, %v1643_v45  ;;  %v1658_v28 = vld [vmem:[%s2169_s25 + $0x3f0] sm:$0xff]  ;;  %v1659_v29 = vld [vmem:[%s2169_s25 + $0x3f8] sm:$0xff] }
  0x70   : > { %v543_v59 = vmax.f32 %v516_v35, %v1636_v30  ;;  %v544_v60 = vmax.f32 %v517_v36, %v1637_v31  ;;  %v545_v0 = vmax.f32 %v518_v40, %v1638_v32  ;;  %v546_v1 = vmax.f32 %v519_v41, %v1639_v37  ;;  %v1662_v40 = vld [vmem:[%s2169_s25 + $0x410] sm:$0xff] }
  0x71   : > { %v547_v2 = vmax.f32 %v520_v42, %v1640_v38  ;;  %v548_v3 = vmax.f32 %v521_v43, %v1641_v39  ;;  %v549_v6 = vmax.f32 %v522_v46, %v1642_v44  ;;  %v550_v7 = vmax.f32 %v523_v47, %v1643_v45  ;;  %v1660_v38 = vld [vmem:[%s2169_s25 + $0x400] sm:$0xff]  ;;  %v1661_v39 = vld [vmem:[%s2169_s25 + $0x408] sm:$0xff]  ;;  %v1663_v45 = vld [vmem:[%s2169_s25 + $0x418] sm:$0xff] }
  0x72   : > { %v562_v8 = vmin.f32 %v535_v48, %v1644_v54  ;;  %v563_v9 = vmin.f32 %v536_v49, %v1645_v55  ;;  %v564_v10 = vmin.f32 %v537_v50, %v1646_v56  ;;  %v565_v11 = vmin.f32 %v538_v51, %v1647_v61  ;;  %v1664_v46 = vld [vmem:[%s2169_s25 + $0x420] sm:$0xff]  ;;  %v1665_v47 = vld [vmem:[%s2169_s25 + $0x428] sm:$0xff] }
  0x73   : > { %v566_v12 = vmin.f32 %v539_v52, %v1648_v62  ;;  %v567_v13 = vmin.f32 %v540_v53, %v1649_v63  ;;  %v568_v17 = vmin.f32 %v541_v57, %v1650_v4  ;;  %v569_v18 = vmin.f32 %v542_v58, %v1651_v5  ;;  %v1666_v52 = vld [vmem:[%s2169_s25 + $0x430] sm:$0xff]  ;;  %v1667_v53 = vld [vmem:[%s2169_s25 + $0x438] sm:$0xff] }
  0x74   : > { %v570_v19 = vmax.f32 %v543_v59, %v1644_v54  ;;  %v571_v20 = vmax.f32 %v544_v60, %v1645_v55  ;;  %v572_v24 = vmax.f32 %v545_v0, %v1646_v56  ;;  %v573_v25 = vmax.f32 %v546_v1, %v1647_v61  ;;  %v1670_v0 = vld [vmem:[%s2169_s25 + $0x450] sm:$0xff] }
  0x75   : > { %v574_v26 = vmax.f32 %v547_v2, %v1648_v62  ;;  %v575_v27 = vmax.f32 %v548_v3, %v1649_v63  ;;  %v576_v30 = vmax.f32 %v549_v6, %v1650_v4  ;;  %v577_v31 = vmax.f32 %v550_v7, %v1651_v5  ;;  %v1668_v62 = vld [vmem:[%s2169_s25 + $0x440] sm:$0xff]  ;;  %v1669_v63 = vld [vmem:[%s2169_s25 + $0x448] sm:$0xff]  ;;  %v1671_v5 = vld [vmem:[%s2169_s25 + $0x458] sm:$0xff] }
  0x76   : > { %v589_v32 = vmin.f32 %v562_v8, %v1652_v14  ;;  %v590_v33 = vmin.f32 %v563_v9, %v1653_v15  ;;  %v591_v34 = vmin.f32 %v564_v10, %v1654_v16  ;;  %v592_v35 = vmin.f32 %v565_v11, %v1655_v21  ;;  %v1672_v6 = vld [vmem:[%s2169_s25 + $0x460] sm:$0xff]  ;;  %v1673_v7 = vld [vmem:[%s2169_s25 + $0x468] sm:$0xff] }
  0x77   : > { %v593_v36 = vmin.f32 %v566_v12, %v1656_v22  ;;  %v594_v37 = vmin.f32 %v567_v13, %v1657_v23  ;;  %v595_v41 = vmin.f32 %v568_v17, %v1658_v28  ;;  %v596_v42 = vmin.f32 %v569_v18, %v1659_v29  ;;  %v1674_v12 = vld [vmem:[%s2169_s25 + $0x470] sm:$0xff]  ;;  %v1675_v13 = vld [vmem:[%s2169_s25 + $0x478] sm:$0xff] }
  0x78   : > { %v597_v43 = vmax.f32 %v570_v19, %v1652_v14  ;;  %v598_v44 = vmax.f32 %v571_v20, %v1653_v15  ;;  %v599_v48 = vmax.f32 %v572_v24, %v1654_v16  ;;  %v600_v49 = vmax.f32 %v573_v25, %v1655_v21  ;;  %v1678_v24 = vld [vmem:[%s2169_s25 + $0x490] sm:$0xff] }
  0x79   : > { %v601_v50 = vmax.f32 %v574_v26, %v1656_v22  ;;  %v602_v51 = vmax.f32 %v575_v27, %v1657_v23  ;;  %v603_v54 = vmax.f32 %v576_v30, %v1658_v28  ;;  %v604_v55 = vmax.f32 %v577_v31, %v1659_v29  ;;  %v1676_v22 = vld [vmem:[%s2169_s25 + $0x480] sm:$0xff]  ;;  %v1677_v23 = vld [vmem:[%s2169_s25 + $0x488] sm:$0xff]  ;;  %v1679_v29 = vld [vmem:[%s2169_s25 + $0x498] sm:$0xff] }
  0x7a   : > { %v616_v56 = vmin.f32 %v589_v32, %v1660_v38  ;;  %v617_v57 = vmin.f32 %v590_v33, %v1661_v39  ;;  %v618_v58 = vmin.f32 %v591_v34, %v1662_v40  ;;  %v619_v59 = vmin.f32 %v592_v35, %v1663_v45  ;;  %v1680_v30 = vld [vmem:[%s2169_s25 + $0x4a0] sm:$0xff]  ;;  %v1681_v31 = vld [vmem:[%s2169_s25 + $0x4a8] sm:$0xff] }
  0x7b   : > { %v620_v60 = vmin.f32 %v593_v36, %v1664_v46  ;;  %v621_v61 = vmin.f32 %v594_v37, %v1665_v47  ;;  %v622_v1 = vmin.f32 %v595_v41, %v1666_v52  ;;  %v623_v2 = vmin.f32 %v596_v42, %v1667_v53  ;;  %v1682_v36 = vld [vmem:[%s2169_s25 + $0x4b0] sm:$0xff]  ;;  %v1683_v37 = vld [vmem:[%s2169_s25 + $0x4b8] sm:$0xff] }
  0x7c   : > { %v624_v3 = vmax.f32 %v597_v43, %v1660_v38  ;;  %v625_v4 = vmax.f32 %v598_v44, %v1661_v39  ;;  %v626_v8 = vmax.f32 %v599_v48, %v1662_v40  ;;  %v627_v9 = vmax.f32 %v600_v49, %v1663_v45  ;;  %v1686_v48 = vld [vmem:[%s2169_s25 + $0x4d0] sm:$0xff] }
  0x7d   : > { %v628_v10 = vmax.f32 %v601_v50, %v1664_v46  ;;  %v629_v11 = vmax.f32 %v602_v51, %v1665_v47  ;;  %v630_v14 = vmax.f32 %v603_v54, %v1666_v52  ;;  %v631_v15 = vmax.f32 %v604_v55, %v1667_v53  ;;  %v1684_v46 = vld [vmem:[%s2169_s25 + $0x4c0] sm:$0xff]  ;;  %v1685_v47 = vld [vmem:[%s2169_s25 + $0x4c8] sm:$0xff]  ;;  %v1687_v53 = vld [vmem:[%s2169_s25 + $0x4d8] sm:$0xff] }
  0x7e   : > { %v643_v16 = vmin.f32 %v616_v56, %v1668_v62  ;;  %v644_v17 = vmin.f32 %v617_v57, %v1669_v63  ;;  %v645_v18 = vmin.f32 %v618_v58, %v1670_v0  ;;  %v646_v19 = vmin.f32 %v619_v59, %v1671_v5  ;;  %v1688_v54 = vld [vmem:[%s2169_s25 + $0x4e0] sm:$0xff]  ;;  %v1689_v55 = vld [vmem:[%s2169_s25 + $0x4e8] sm:$0xff] }
  0x7f   : > { %v647_v20 = vmin.f32 %v620_v60, %v1672_v6  ;;  %v648_v21 = vmin.f32 %v621_v61, %v1673_v7  ;;  %v649_v25 = vmin.f32 %v622_v1, %v1674_v12  ;;  %v650_v26 = vmin.f32 %v623_v2, %v1675_v13  ;;  %v1690_v60 = vld [vmem:[%s2169_s25 + $0x4f0] sm:$0xff]  ;;  %v1691_v61 = vld [vmem:[%s2169_s25 + $0x4f8] sm:$0xff] }
  0x80   : > { %v651_v27 = vmax.f32 %v624_v3, %v1668_v62  ;;  %v652_v28 = vmax.f32 %v625_v4, %v1669_v63  ;;  %v653_v32 = vmax.f32 %v626_v8, %v1670_v0  ;;  %v654_v33 = vmax.f32 %v627_v9, %v1671_v5  ;;  %v1694_v8 = vld [vmem:[%s2169_s25 + $0x510] sm:$0xff] }
  0x81   : > { %v655_v34 = vmax.f32 %v628_v10, %v1672_v6  ;;  %v656_v35 = vmax.f32 %v629_v11, %v1673_v7  ;;  %v657_v38 = vmax.f32 %v630_v14, %v1674_v12  ;;  %v658_v39 = vmax.f32 %v631_v15, %v1675_v13  ;;  %v1692_v6 = vld [vmem:[%s2169_s25 + $0x500] sm:$0xff]  ;;  %v1693_v7 = vld [vmem:[%s2169_s25 + $0x508] sm:$0xff]  ;;  %v1695_v13 = vld [vmem:[%s2169_s25 + $0x518] sm:$0xff] }
  0x82   : > { %v670_v40 = vmin.f32 %v643_v16, %v1676_v22  ;;  %v671_v41 = vmin.f32 %v644_v17, %v1677_v23  ;;  %v672_v42 = vmin.f32 %v645_v18, %v1678_v24  ;;  %v673_v43 = vmin.f32 %v646_v19, %v1679_v29  ;;  %v1696_v14 = vld [vmem:[%s2169_s25 + $0x520] sm:$0xff]  ;;  %v1697_v15 = vld [vmem:[%s2169_s25 + $0x528] sm:$0xff] }
  0x83   : > { %v674_v44 = vmin.f32 %v647_v20, %v1680_v30  ;;  %v675_v45 = vmin.f32 %v648_v21, %v1681_v31  ;;  %v676_v49 = vmin.f32 %v649_v25, %v1682_v36  ;;  %v677_v50 = vmin.f32 %v650_v26, %v1683_v37  ;;  %v1698_v20 = vld [vmem:[%s2169_s25 + $0x530] sm:$0xff]  ;;  %v1699_v21 = vld [vmem:[%s2169_s25 + $0x538] sm:$0xff] }
  0x84   : > { %v678_v51 = vmax.f32 %v651_v27, %v1676_v22  ;;  %v679_v52 = vmax.f32 %v652_v28, %v1677_v23  ;;  %v680_v56 = vmax.f32 %v653_v32, %v1678_v24  ;;  %v681_v57 = vmax.f32 %v654_v33, %v1679_v29  ;;  %v1702_v32 = vld [vmem:[%s2169_s25 + $0x550] sm:$0xff] }
  0x85   : > { %v682_v58 = vmax.f32 %v655_v34, %v1680_v30  ;;  %v683_v59 = vmax.f32 %v656_v35, %v1681_v31  ;;  %v684_v62 = vmax.f32 %v657_v38, %v1682_v36  ;;  %v685_v63 = vmax.f32 %v658_v39, %v1683_v37  ;;  %v1700_v30 = vld [vmem:[%s2169_s25 + $0x540] sm:$0xff]  ;;  %v1701_v31 = vld [vmem:[%s2169_s25 + $0x548] sm:$0xff]  ;;  %v1703_v37 = vld [vmem:[%s2169_s25 + $0x558] sm:$0xff] }
  0x86   : > { %v697_v0 = vmin.f32 %v670_v40, %v1684_v46  ;;  %v698_v1 = vmin.f32 %v671_v41, %v1685_v47  ;;  %v699_v2 = vmin.f32 %v672_v42, %v1686_v48  ;;  %v700_v3 = vmin.f32 %v673_v43, %v1687_v53  ;;  %v1704_v38 = vld [vmem:[%s2169_s25 + $0x560] sm:$0xff]  ;;  %v1705_v39 = vld [vmem:[%s2169_s25 + $0x568] sm:$0xff] }
  0x87   : > { %v701_v4 = vmin.f32 %v674_v44, %v1688_v54  ;;  %v702_v5 = vmin.f32 %v675_v45, %v1689_v55  ;;  %v703_v9 = vmin.f32 %v676_v49, %v1690_v60  ;;  %v704_v10 = vmin.f32 %v677_v50, %v1691_v61  ;;  %v1706_v44 = vld [vmem:[%s2169_s25 + $0x570] sm:$0xff]  ;;  %v1707_v45 = vld [vmem:[%s2169_s25 + $0x578] sm:$0xff] }
  0x88   : > { %v705_v11 = vmax.f32 %v678_v51, %v1684_v46  ;;  %v706_v12 = vmax.f32 %v679_v52, %v1685_v47  ;;  %v707_v16 = vmax.f32 %v680_v56, %v1686_v48  ;;  %v708_v17 = vmax.f32 %v681_v57, %v1687_v53  ;;  %v1710_v56 = vld [vmem:[%s2169_s25 + $0x590] sm:$0xff] }
  0x89   : > { %v709_v18 = vmax.f32 %v682_v58, %v1688_v54  ;;  %v710_v19 = vmax.f32 %v683_v59, %v1689_v55  ;;  %v711_v22 = vmax.f32 %v684_v62, %v1690_v60  ;;  %v712_v23 = vmax.f32 %v685_v63, %v1691_v61  ;;  %v1708_v54 = vld [vmem:[%s2169_s25 + $0x580] sm:$0xff]  ;;  %v1709_v55 = vld [vmem:[%s2169_s25 + $0x588] sm:$0xff]  ;;  %v1711_v61 = vld [vmem:[%s2169_s25 + $0x598] sm:$0xff] }
  0x8a   : > { %v724_v24 = vmin.f32 %v697_v0, %v1692_v6  ;;  %v725_v25 = vmin.f32 %v698_v1, %v1693_v7  ;;  %v726_v26 = vmin.f32 %v699_v2, %v1694_v8  ;;  %v727_v27 = vmin.f32 %v700_v3, %v1695_v13  ;;  %v1712_v62 = vld [vmem:[%s2169_s25 + $0x5a0] sm:$0xff]  ;;  %v1713_v63 = vld [vmem:[%s2169_s25 + $0x5a8] sm:$0xff] }
  0x8b   : > { %v728_v28 = vmin.f32 %v701_v4, %v1696_v14  ;;  %v729_v29 = vmin.f32 %v702_v5, %v1697_v15  ;;  %v730_v33 = vmin.f32 %v703_v9, %v1698_v20  ;;  %v731_v34 = vmin.f32 %v704_v10, %v1699_v21  ;;  %v1714_v4 = vld [vmem:[%s2169_s25 + $0x5b0] sm:$0xff]  ;;  %v1715_v5 = vld [vmem:[%s2169_s25 + $0x5b8] sm:$0xff] }
  0x8c   : > { %v732_v35 = vmax.f32 %v705_v11, %v1692_v6  ;;  %v733_v36 = vmax.f32 %v706_v12, %v1693_v7  ;;  %v734_v40 = vmax.f32 %v707_v16, %v1694_v8  ;;  %v735_v41 = vmax.f32 %v708_v17, %v1695_v13  ;;  %v1718_v16 = vld [vmem:[%s2169_s25 + $0x5d0] sm:$0xff] }
  0x8d   : > { %v736_v42 = vmax.f32 %v709_v18, %v1696_v14  ;;  %v737_v43 = vmax.f32 %v710_v19, %v1697_v15  ;;  %v738_v46 = vmax.f32 %v711_v22, %v1698_v20  ;;  %v739_v47 = vmax.f32 %v712_v23, %v1699_v21  ;;  %v1716_v14 = vld [vmem:[%s2169_s25 + $0x5c0] sm:$0xff]  ;;  %v1717_v15 = vld [vmem:[%s2169_s25 + $0x5c8] sm:$0xff]  ;;  %v1719_v21 = vld [vmem:[%s2169_s25 + $0x5d8] sm:$0xff] }
  0x8e   : > { %v751_v48 = vmin.f32 %v724_v24, %v1700_v30  ;;  %v752_v49 = vmin.f32 %v725_v25, %v1701_v31  ;;  %v753_v50 = vmin.f32 %v726_v26, %v1702_v32  ;;  %v754_v51 = vmin.f32 %v727_v27, %v1703_v37  ;;  %v1720_v22 = vld [vmem:[%s2169_s25 + $0x5e0] sm:$0xff]  ;;  %v1721_v23 = vld [vmem:[%s2169_s25 + $0x5e8] sm:$0xff] }
  0x8f   : > { %v755_v52 = vmin.f32 %v728_v28, %v1704_v38  ;;  %v756_v53 = vmin.f32 %v729_v29, %v1705_v39  ;;  %v757_v57 = vmin.f32 %v730_v33, %v1706_v44  ;;  %v758_v58 = vmin.f32 %v731_v34, %v1707_v45  ;;  %v1722_v28 = vld [vmem:[%s2169_s25 + $0x5f0] sm:$0xff]  ;;  %v1723_v29 = vld [vmem:[%s2169_s25 + $0x5f8] sm:$0xff] }
  0x90   : > { %v759_v59 = vmax.f32 %v732_v35, %v1700_v30  ;;  %v760_v60 = vmax.f32 %v733_v36, %v1701_v31  ;;  %v761_v0 = vmax.f32 %v734_v40, %v1702_v32  ;;  %v762_v1 = vmax.f32 %v735_v41, %v1703_v37  ;;  %v1726_v40 = vld [vmem:[%s2169_s25 + $0x610] sm:$0xff] }
  0x91   : > { %v763_v2 = vmax.f32 %v736_v42, %v1704_v38  ;;  %v764_v3 = vmax.f32 %v737_v43, %v1705_v39  ;;  %v765_v6 = vmax.f32 %v738_v46, %v1706_v44  ;;  %v766_v7 = vmax.f32 %v739_v47, %v1707_v45  ;;  %v1724_v38 = vld [vmem:[%s2169_s25 + $0x600] sm:$0xff]  ;;  %v1725_v39 = vld [vmem:[%s2169_s25 + $0x608] sm:$0xff]  ;;  %v1727_v45 = vld [vmem:[%s2169_s25 + $0x618] sm:$0xff] }
  0x92   : > { %v778_v8 = vmin.f32 %v751_v48, %v1708_v54  ;;  %v779_v9 = vmin.f32 %v752_v49, %v1709_v55  ;;  %v780_v10 = vmin.f32 %v753_v50, %v1710_v56  ;;  %v781_v11 = vmin.f32 %v754_v51, %v1711_v61  ;;  %v1728_v46 = vld [vmem:[%s2169_s25 + $0x620] sm:$0xff]  ;;  %v1729_v47 = vld [vmem:[%s2169_s25 + $0x628] sm:$0xff] }
  0x93   : > { %v782_v12 = vmin.f32 %v755_v52, %v1712_v62  ;;  %v783_v13 = vmin.f32 %v756_v53, %v1713_v63  ;;  %v784_v17 = vmin.f32 %v757_v57, %v1714_v4  ;;  %v785_v18 = vmin.f32 %v758_v58, %v1715_v5  ;;  %v1730_v52 = vld [vmem:[%s2169_s25 + $0x630] sm:$0xff]  ;;  %v1731_v53 = vld [vmem:[%s2169_s25 + $0x638] sm:$0xff] }
  0x94   : > { %v786_v19 = vmax.f32 %v759_v59, %v1708_v54  ;;  %v787_v20 = vmax.f32 %v760_v60, %v1709_v55  ;;  %v788_v24 = vmax.f32 %v761_v0, %v1710_v56  ;;  %v789_v25 = vmax.f32 %v762_v1, %v1711_v61  ;;  %v1734_v0 = vld [vmem:[%s2169_s25 + $0x650] sm:$0xff] }
  0x95   : > { %v790_v26 = vmax.f32 %v763_v2, %v1712_v62  ;;  %v791_v27 = vmax.f32 %v764_v3, %v1713_v63  ;;  %v792_v30 = vmax.f32 %v765_v6, %v1714_v4  ;;  %v793_v31 = vmax.f32 %v766_v7, %v1715_v5  ;;  %v1732_v62 = vld [vmem:[%s2169_s25 + $0x640] sm:$0xff]  ;;  %v1733_v63 = vld [vmem:[%s2169_s25 + $0x648] sm:$0xff]  ;;  %v1735_v5 = vld [vmem:[%s2169_s25 + $0x658] sm:$0xff] }
  0x96   : > { %v805_v32 = vmin.f32 %v778_v8, %v1716_v14  ;;  %v806_v33 = vmin.f32 %v779_v9, %v1717_v15  ;;  %v807_v34 = vmin.f32 %v780_v10, %v1718_v16  ;;  %v808_v35 = vmin.f32 %v781_v11, %v1719_v21  ;;  %v1736_v6 = vld [vmem:[%s2169_s25 + $0x660] sm:$0xff]  ;;  %v1737_v7 = vld [vmem:[%s2169_s25 + $0x668] sm:$0xff] }
  0x97   : > { %v809_v36 = vmin.f32 %v782_v12, %v1720_v22  ;;  %v810_v37 = vmin.f32 %v783_v13, %v1721_v23  ;;  %v811_v41 = vmin.f32 %v784_v17, %v1722_v28  ;;  %v812_v42 = vmin.f32 %v785_v18, %v1723_v29  ;;  %v1738_v12 = vld [vmem:[%s2169_s25 + $0x670] sm:$0xff]  ;;  %v1739_v13 = vld [vmem:[%s2169_s25 + $0x678] sm:$0xff] }
  0x98   : > { %v813_v43 = vmax.f32 %v786_v19, %v1716_v14  ;;  %v814_v44 = vmax.f32 %v787_v20, %v1717_v15  ;;  %v815_v48 = vmax.f32 %v788_v24, %v1718_v16  ;;  %v816_v49 = vmax.f32 %v789_v25, %v1719_v21  ;;  %v1742_v24 = vld [vmem:[%s2169_s25 + $0x690] sm:$0xff] }
  0x99   : > { %v817_v50 = vmax.f32 %v790_v26, %v1720_v22  ;;  %v818_v51 = vmax.f32 %v791_v27, %v1721_v23  ;;  %v819_v54 = vmax.f32 %v792_v30, %v1722_v28  ;;  %v820_v55 = vmax.f32 %v793_v31, %v1723_v29  ;;  %v1740_v22 = vld [vmem:[%s2169_s25 + $0x680] sm:$0xff]  ;;  %v1741_v23 = vld [vmem:[%s2169_s25 + $0x688] sm:$0xff]  ;;  %v1743_v29 = vld [vmem:[%s2169_s25 + $0x698] sm:$0xff] }
  0x9a   : > { %v832_v56 = vmin.f32 %v805_v32, %v1724_v38  ;;  %v833_v57 = vmin.f32 %v806_v33, %v1725_v39  ;;  %v834_v58 = vmin.f32 %v807_v34, %v1726_v40  ;;  %v835_v59 = vmin.f32 %v808_v35, %v1727_v45  ;;  %v1744_v30 = vld [vmem:[%s2169_s25 + $0x6a0] sm:$0xff]  ;;  %v1745_v31 = vld [vmem:[%s2169_s25 + $0x6a8] sm:$0xff] }
  0x9b   : > { %v836_v60 = vmin.f32 %v809_v36, %v1728_v46  ;;  %v837_v61 = vmin.f32 %v810_v37, %v1729_v47  ;;  %v838_v1 = vmin.f32 %v811_v41, %v1730_v52  ;;  %v839_v2 = vmin.f32 %v812_v42, %v1731_v53  ;;  %v1746_v36 = vld [vmem:[%s2169_s25 + $0x6b0] sm:$0xff]  ;;  %v1747_v37 = vld [vmem:[%s2169_s25 + $0x6b8] sm:$0xff] }
  0x9c   : > { %v840_v3 = vmax.f32 %v813_v43, %v1724_v38  ;;  %v841_v4 = vmax.f32 %v814_v44, %v1725_v39  ;;  %v842_v8 = vmax.f32 %v815_v48, %v1726_v40  ;;  %v843_v9 = vmax.f32 %v816_v49, %v1727_v45  ;;  %v1750_v48 = vld [vmem:[%s2169_s25 + $0x6d0] sm:$0xff] }
  0x9d   : > { %v844_v10 = vmax.f32 %v817_v50, %v1728_v46  ;;  %v845_v11 = vmax.f32 %v818_v51, %v1729_v47  ;;  %v846_v14 = vmax.f32 %v819_v54, %v1730_v52  ;;  %v847_v15 = vmax.f32 %v820_v55, %v1731_v53  ;;  %v1748_v46 = vld [vmem:[%s2169_s25 + $0x6c0] sm:$0xff]  ;;  %v1749_v47 = vld [vmem:[%s2169_s25 + $0x6c8] sm:$0xff]  ;;  %v1751_v53 = vld [vmem:[%s2169_s25 + $0x6d8] sm:$0xff] }
  0x9e   : > { %v859_v16 = vmin.f32 %v832_v56, %v1732_v62  ;;  %v860_v17 = vmin.f32 %v833_v57, %v1733_v63  ;;  %v861_v18 = vmin.f32 %v834_v58, %v1734_v0  ;;  %v862_v19 = vmin.f32 %v835_v59, %v1735_v5  ;;  %v1752_v54 = vld [vmem:[%s2169_s25 + $0x6e0] sm:$0xff]  ;;  %v1753_v55 = vld [vmem:[%s2169_s25 + $0x6e8] sm:$0xff] }
  0x9f   : > { %v863_v20 = vmin.f32 %v836_v60, %v1736_v6  ;;  %v864_v21 = vmin.f32 %v837_v61, %v1737_v7  ;;  %v865_v25 = vmin.f32 %v838_v1, %v1738_v12  ;;  %v866_v26 = vmin.f32 %v839_v2, %v1739_v13  ;;  %v1754_v60 = vld [vmem:[%s2169_s25 + $0x6f0] sm:$0xff]  ;;  %v1755_v61 = vld [vmem:[%s2169_s25 + $0x6f8] sm:$0xff] }
  0xa0   : > { %v867_v27 = vmax.f32 %v840_v3, %v1732_v62  ;;  %v868_v28 = vmax.f32 %v841_v4, %v1733_v63  ;;  %v869_v32 = vmax.f32 %v842_v8, %v1734_v0  ;;  %v870_v33 = vmax.f32 %v843_v9, %v1735_v5  ;;  %v1758_v8 = vld [vmem:[%s2169_s25 + $0x710] sm:$0xff] }
  0xa1   : > { %v871_v34 = vmax.f32 %v844_v10, %v1736_v6  ;;  %v872_v35 = vmax.f32 %v845_v11, %v1737_v7  ;;  %v873_v38 = vmax.f32 %v846_v14, %v1738_v12  ;;  %v874_v39 = vmax.f32 %v847_v15, %v1739_v13  ;;  %v1756_v6 = vld [vmem:[%s2169_s25 + $0x700] sm:$0xff]  ;;  %v1757_v7 = vld [vmem:[%s2169_s25 + $0x708] sm:$0xff]  ;;  %v1759_v13 = vld [vmem:[%s2169_s25 + $0x718] sm:$0xff] }
  0xa2   : > { %v886_v40 = vmin.f32 %v859_v16, %v1740_v22  ;;  %v887_v41 = vmin.f32 %v860_v17, %v1741_v23  ;;  %v888_v42 = vmin.f32 %v861_v18, %v1742_v24  ;;  %v889_v43 = vmin.f32 %v862_v19, %v1743_v29  ;;  %v1760_v14 = vld [vmem:[%s2169_s25 + $0x720] sm:$0xff]  ;;  %v1761_v15 = vld [vmem:[%s2169_s25 + $0x728] sm:$0xff] }
  0xa3   : > { %v890_v44 = vmin.f32 %v863_v20, %v1744_v30  ;;  %v891_v45 = vmin.f32 %v864_v21, %v1745_v31  ;;  %v892_v49 = vmin.f32 %v865_v25, %v1746_v36  ;;  %v893_v50 = vmin.f32 %v866_v26, %v1747_v37  ;;  %v1762_v20 = vld [vmem:[%s2169_s25 + $0x730] sm:$0xff]  ;;  %v1763_v21 = vld [vmem:[%s2169_s25 + $0x738] sm:$0xff] }
  0xa4   : > { %v894_v51 = vmax.f32 %v867_v27, %v1740_v22  ;;  %v895_v52 = vmax.f32 %v868_v28, %v1741_v23  ;;  %v896_v56 = vmax.f32 %v869_v32, %v1742_v24  ;;  %v897_v57 = vmax.f32 %v870_v33, %v1743_v29  ;;  %v1766_v32 = vld [vmem:[%s2169_s25 + $0x750] sm:$0xff] }
  0xa5   : > { %v898_v58 = vmax.f32 %v871_v34, %v1744_v30  ;;  %v899_v59 = vmax.f32 %v872_v35, %v1745_v31  ;;  %v900_v62 = vmax.f32 %v873_v38, %v1746_v36  ;;  %v901_v63 = vmax.f32 %v874_v39, %v1747_v37  ;;  %v1764_v30 = vld [vmem:[%s2169_s25 + $0x740] sm:$0xff]  ;;  %v1765_v31 = vld [vmem:[%s2169_s25 + $0x748] sm:$0xff]  ;;  %v1767_v37 = vld [vmem:[%s2169_s25 + $0x758] sm:$0xff] }
  0xa6   : > { %v913_v0 = vmin.f32 %v886_v40, %v1748_v46  ;;  %v914_v1 = vmin.f32 %v887_v41, %v1749_v47  ;;  %v915_v2 = vmin.f32 %v888_v42, %v1750_v48  ;;  %v916_v3 = vmin.f32 %v889_v43, %v1751_v53  ;;  %v1768_v38 = vld [vmem:[%s2169_s25 + $0x760] sm:$0xff]  ;;  %v1769_v39 = vld [vmem:[%s2169_s25 + $0x768] sm:$0xff] }
  0xa7   : > { %v917_v4 = vmin.f32 %v890_v44, %v1752_v54  ;;  %v918_v5 = vmin.f32 %v891_v45, %v1753_v55  ;;  %v919_v9 = vmin.f32 %v892_v49, %v1754_v60  ;;  %v920_v10 = vmin.f32 %v893_v50, %v1755_v61  ;;  %v1770_v44 = vld [vmem:[%s2169_s25 + $0x770] sm:$0xff]  ;;  %v1771_v45 = vld [vmem:[%s2169_s25 + $0x778] sm:$0xff] }
  0xa8   : > { %v921_v11 = vmax.f32 %v894_v51, %v1748_v46  ;;  %v922_v12 = vmax.f32 %v895_v52, %v1749_v47  ;;  %v923_v16 = vmax.f32 %v896_v56, %v1750_v48  ;;  %v924_v17 = vmax.f32 %v897_v57, %v1751_v53  ;;  %v1774_v56 = vld [vmem:[%s2169_s25 + $0x790] sm:$0xff] }
  0xa9   : > { %v925_v18 = vmax.f32 %v898_v58, %v1752_v54  ;;  %v926_v19 = vmax.f32 %v899_v59, %v1753_v55  ;;  %v927_v22 = vmax.f32 %v900_v62, %v1754_v60  ;;  %v928_v23 = vmax.f32 %v901_v63, %v1755_v61  ;;  %v1772_v54 = vld [vmem:[%s2169_s25 + $0x780] sm:$0xff]  ;;  %v1773_v55 = vld [vmem:[%s2169_s25 + $0x788] sm:$0xff]  ;;  %v1775_v61 = vld [vmem:[%s2169_s25 + $0x798] sm:$0xff] }
  0xaa   : > { %v940_v24 = vmin.f32 %v913_v0, %v1756_v6  ;;  %v941_v25 = vmin.f32 %v914_v1, %v1757_v7  ;;  %v942_v26 = vmin.f32 %v915_v2, %v1758_v8  ;;  %v943_v27 = vmin.f32 %v916_v3, %v1759_v13  ;;  %v1776_v62 = vld [vmem:[%s2169_s25 + $0x7a0] sm:$0xff]  ;;  %v1777_v63 = vld [vmem:[%s2169_s25 + $0x7a8] sm:$0xff] }
  0xab   : > { %v944_v28 = vmin.f32 %v917_v4, %v1760_v14  ;;  %v945_v29 = vmin.f32 %v918_v5, %v1761_v15  ;;  %v946_v33 = vmin.f32 %v919_v9, %v1762_v20  ;;  %v947_v34 = vmin.f32 %v920_v10, %v1763_v21  ;;  %v1778_v4 = vld [vmem:[%s2169_s25 + $0x7b0] sm:$0xff]  ;;  %v1779_v5 = vld [vmem:[%s2169_s25 + $0x7b8] sm:$0xff] }
  0xac   : > { %v948_v35 = vmax.f32 %v921_v11, %v1756_v6  ;;  %v949_v36 = vmax.f32 %v922_v12, %v1757_v7  ;;  %v950_v40 = vmax.f32 %v923_v16, %v1758_v8  ;;  %v951_v41 = vmax.f32 %v924_v17, %v1759_v13  ;;  %v1782_v16 = vld [vmem:[%s2169_s25 + $0x7d0] sm:$0xff] }
  0xad   : > { %v952_v42 = vmax.f32 %v925_v18, %v1760_v14  ;;  %v953_v43 = vmax.f32 %v926_v19, %v1761_v15  ;;  %v954_v46 = vmax.f32 %v927_v22, %v1762_v20  ;;  %v955_v47 = vmax.f32 %v928_v23, %v1763_v21  ;;  %v1780_v14 = vld [vmem:[%s2169_s25 + $0x7c0] sm:$0xff]  ;;  %v1781_v15 = vld [vmem:[%s2169_s25 + $0x7c8] sm:$0xff]  ;;  %v1783_v21 = vld [vmem:[%s2169_s25 + $0x7d8] sm:$0xff] }
  0xae   : > { %v967_v48 = vmin.f32 %v940_v24, %v1764_v30  ;;  %v968_v49 = vmin.f32 %v941_v25, %v1765_v31  ;;  %v969_v50 = vmin.f32 %v942_v26, %v1766_v32  ;;  %v970_v51 = vmin.f32 %v943_v27, %v1767_v37  ;;  %v1784_v22 = vld [vmem:[%s2169_s25 + $0x7e0] sm:$0xff]  ;;  %v1785_v23 = vld [vmem:[%s2169_s25 + $0x7e8] sm:$0xff] }
  0xaf   : > { %v971_v52 = vmin.f32 %v944_v28, %v1768_v38  ;;  %v972_v53 = vmin.f32 %v945_v29, %v1769_v39  ;;  %v973_v57 = vmin.f32 %v946_v33, %v1770_v44  ;;  %v974_v58 = vmin.f32 %v947_v34, %v1771_v45  ;;  %v1786_v28 = vld [vmem:[%s2169_s25 + $0x7f0] sm:$0xff]  ;;  %v1787_v29 = vld [vmem:[%s2169_s25 + $0x7f8] sm:$0xff] }
  0xb0   : > { %v975_v59 = vmax.f32 %v948_v35, %v1764_v30  ;;  %v976_v60 = vmax.f32 %v949_v36, %v1765_v31  ;;  %v977_v0 = vmax.f32 %v950_v40, %v1766_v32  ;;  %v978_v1 = vmax.f32 %v951_v41, %v1767_v37  ;;  %v1790_v40 = vld [vmem:[%s2169_s25 + $0x810] sm:$0xff] }
  0xb1   : > { %v979_v2 = vmax.f32 %v952_v42, %v1768_v38  ;;  %v980_v3 = vmax.f32 %v953_v43, %v1769_v39  ;;  %v981_v6 = vmax.f32 %v954_v46, %v1770_v44  ;;  %v982_v7 = vmax.f32 %v955_v47, %v1771_v45  ;;  %v1788_v38 = vld [vmem:[%s2169_s25 + $0x800] sm:$0xff]  ;;  %v1789_v39 = vld [vmem:[%s2169_s25 + $0x808] sm:$0xff]  ;;  %v1791_v45 = vld [vmem:[%s2169_s25 + $0x818] sm:$0xff] }
  0xb2   : > { %v994_v8 = vmin.f32 %v967_v48, %v1772_v54  ;;  %v995_v9 = vmin.f32 %v968_v49, %v1773_v55  ;;  %v996_v10 = vmin.f32 %v969_v50, %v1774_v56  ;;  %v997_v11 = vmin.f32 %v970_v51, %v1775_v61  ;;  %v1792_v46 = vld [vmem:[%s2169_s25 + $0x820] sm:$0xff]  ;;  %v1793_v47 = vld [vmem:[%s2169_s25 + $0x828] sm:$0xff] }
  0xb3   : > { %v998_v12 = vmin.f32 %v971_v52, %v1776_v62  ;;  %v999_v13 = vmin.f32 %v972_v53, %v1777_v63  ;;  %v1000_v17 = vmin.f32 %v973_v57, %v1778_v4  ;;  %v1001_v18 = vmin.f32 %v974_v58, %v1779_v5  ;;  %v1794_v52 = vld [vmem:[%s2169_s25 + $0x830] sm:$0xff]  ;;  %v1795_v53 = vld [vmem:[%s2169_s25 + $0x838] sm:$0xff] }
  0xb4   : > { %v1002_v19 = vmax.f32 %v975_v59, %v1772_v54  ;;  %v1003_v20 = vmax.f32 %v976_v60, %v1773_v55  ;;  %v1004_v24 = vmax.f32 %v977_v0, %v1774_v56  ;;  %v1005_v25 = vmax.f32 %v978_v1, %v1775_v61  ;;  %v1798_v0 = vld [vmem:[%s2169_s25 + $0x850] sm:$0xff] }
  0xb5   : > { %v1006_v26 = vmax.f32 %v979_v2, %v1776_v62  ;;  %v1007_v27 = vmax.f32 %v980_v3, %v1777_v63  ;;  %v1008_v30 = vmax.f32 %v981_v6, %v1778_v4  ;;  %v1009_v31 = vmax.f32 %v982_v7, %v1779_v5  ;;  %v1796_v62 = vld [vmem:[%s2169_s25 + $0x840] sm:$0xff]  ;;  %v1797_v63 = vld [vmem:[%s2169_s25 + $0x848] sm:$0xff]  ;;  %v1799_v5 = vld [vmem:[%s2169_s25 + $0x858] sm:$0xff] }
  0xb6   : > { %v1021_v32 = vmin.f32 %v994_v8, %v1780_v14  ;;  %v1022_v33 = vmin.f32 %v995_v9, %v1781_v15  ;;  %v1023_v34 = vmin.f32 %v996_v10, %v1782_v16  ;;  %v1024_v35 = vmin.f32 %v997_v11, %v1783_v21  ;;  %v1800_v6 = vld [vmem:[%s2169_s25 + $0x860] sm:$0xff]  ;;  %v1801_v7 = vld [vmem:[%s2169_s25 + $0x868] sm:$0xff] }
  0xb7   : > { %v1025_v36 = vmin.f32 %v998_v12, %v1784_v22  ;;  %v1026_v37 = vmin.f32 %v999_v13, %v1785_v23  ;;  %v1027_v41 = vmin.f32 %v1000_v17, %v1786_v28  ;;  %v1028_v42 = vmin.f32 %v1001_v18, %v1787_v29  ;;  %v1802_v12 = vld [vmem:[%s2169_s25 + $0x870] sm:$0xff]  ;;  %v1803_v13 = vld [vmem:[%s2169_s25 + $0x878] sm:$0xff] }
  0xb8   : > { %v1029_v43 = vmax.f32 %v1002_v19, %v1780_v14  ;;  %v1030_v44 = vmax.f32 %v1003_v20, %v1781_v15  ;;  %v1031_v48 = vmax.f32 %v1004_v24, %v1782_v16  ;;  %v1032_v49 = vmax.f32 %v1005_v25, %v1783_v21  ;;  %v1806_v24 = vld [vmem:[%s2169_s25 + $0x890] sm:$0xff] }
  0xb9   : > { %v1033_v50 = vmax.f32 %v1006_v26, %v1784_v22  ;;  %v1034_v51 = vmax.f32 %v1007_v27, %v1785_v23  ;;  %v1035_v54 = vmax.f32 %v1008_v30, %v1786_v28  ;;  %v1036_v55 = vmax.f32 %v1009_v31, %v1787_v29  ;;  %v1804_v22 = vld [vmem:[%s2169_s25 + $0x880] sm:$0xff]  ;;  %v1805_v23 = vld [vmem:[%s2169_s25 + $0x888] sm:$0xff]  ;;  %v1807_v29 = vld [vmem:[%s2169_s25 + $0x898] sm:$0xff] }
  0xba   : > { %v1048_v56 = vmin.f32 %v1021_v32, %v1788_v38  ;;  %v1049_v57 = vmin.f32 %v1022_v33, %v1789_v39  ;;  %v1050_v58 = vmin.f32 %v1023_v34, %v1790_v40  ;;  %v1051_v59 = vmin.f32 %v1024_v35, %v1791_v45  ;;  %v1808_v30 = vld [vmem:[%s2169_s25 + $0x8a0] sm:$0xff]  ;;  %v1809_v31 = vld [vmem:[%s2169_s25 + $0x8a8] sm:$0xff] }
  0xbb   : > { %v1052_v60 = vmin.f32 %v1025_v36, %v1792_v46  ;;  %v1053_v61 = vmin.f32 %v1026_v37, %v1793_v47  ;;  %v1054_v1 = vmin.f32 %v1027_v41, %v1794_v52  ;;  %v1055_v2 = vmin.f32 %v1028_v42, %v1795_v53  ;;  %v1810_v36 = vld [vmem:[%s2169_s25 + $0x8b0] sm:$0xff]  ;;  %v1811_v37 = vld [vmem:[%s2169_s25 + $0x8b8] sm:$0xff] }
  0xbc   : > { %v1056_v3 = vmax.f32 %v1029_v43, %v1788_v38  ;;  %v1057_v4 = vmax.f32 %v1030_v44, %v1789_v39  ;;  %v1058_v8 = vmax.f32 %v1031_v48, %v1790_v40  ;;  %v1059_v9 = vmax.f32 %v1032_v49, %v1791_v45  ;;  %v1814_v48 = vld [vmem:[%s2169_s25 + $0x8d0] sm:$0xff] }
  0xbd   : > { %v1060_v10 = vmax.f32 %v1033_v50, %v1792_v46  ;;  %v1061_v11 = vmax.f32 %v1034_v51, %v1793_v47  ;;  %v1062_v14 = vmax.f32 %v1035_v54, %v1794_v52  ;;  %v1063_v15 = vmax.f32 %v1036_v55, %v1795_v53  ;;  %v1812_v46 = vld [vmem:[%s2169_s25 + $0x8c0] sm:$0xff]  ;;  %v1813_v47 = vld [vmem:[%s2169_s25 + $0x8c8] sm:$0xff]  ;;  %v1815_v53 = vld [vmem:[%s2169_s25 + $0x8d8] sm:$0xff] }
  0xbe   : > { %v1075_v16 = vmin.f32 %v1048_v56, %v1796_v62  ;;  %v1076_v17 = vmin.f32 %v1049_v57, %v1797_v63  ;;  %v1077_v18 = vmin.f32 %v1050_v58, %v1798_v0  ;;  %v1078_v19 = vmin.f32 %v1051_v59, %v1799_v5  ;;  %v1816_v54 = vld [vmem:[%s2169_s25 + $0x8e0] sm:$0xff]  ;;  %v1817_v55 = vld [vmem:[%s2169_s25 + $0x8e8] sm:$0xff] }
  0xbf   : > { %v1079_v20 = vmin.f32 %v1052_v60, %v1800_v6  ;;  %v1080_v21 = vmin.f32 %v1053_v61, %v1801_v7  ;;  %v1081_v25 = vmin.f32 %v1054_v1, %v1802_v12  ;;  %v1082_v26 = vmin.f32 %v1055_v2, %v1803_v13  ;;  %v1818_v60 = vld [vmem:[%s2169_s25 + $0x8f0] sm:$0xff]  ;;  %v1819_v61 = vld [vmem:[%s2169_s25 + $0x8f8] sm:$0xff] }
  0xc0   : > { %v1083_v27 = vmax.f32 %v1056_v3, %v1796_v62  ;;  %v1084_v28 = vmax.f32 %v1057_v4, %v1797_v63  ;;  %v1085_v32 = vmax.f32 %v1058_v8, %v1798_v0  ;;  %v1086_v33 = vmax.f32 %v1059_v9, %v1799_v5  ;;  %v1822_v8 = vld [vmem:[%s2169_s25 + $0x910] sm:$0xff] }
  0xc1   : > { %v1087_v34 = vmax.f32 %v1060_v10, %v1800_v6  ;;  %v1088_v35 = vmax.f32 %v1061_v11, %v1801_v7  ;;  %v1089_v38 = vmax.f32 %v1062_v14, %v1802_v12  ;;  %v1090_v39 = vmax.f32 %v1063_v15, %v1803_v13  ;;  %v1820_v6 = vld [vmem:[%s2169_s25 + $0x900] sm:$0xff]  ;;  %v1821_v7 = vld [vmem:[%s2169_s25 + $0x908] sm:$0xff]  ;;  %v1823_v13 = vld [vmem:[%s2169_s25 + $0x918] sm:$0xff] }
  0xc2   : > { %v1102_v40 = vmin.f32 %v1075_v16, %v1804_v22  ;;  %v1103_v41 = vmin.f32 %v1076_v17, %v1805_v23  ;;  %v1104_v42 = vmin.f32 %v1077_v18, %v1806_v24  ;;  %v1105_v43 = vmin.f32 %v1078_v19, %v1807_v29  ;;  %v1824_v14 = vld [vmem:[%s2169_s25 + $0x920] sm:$0xff]  ;;  %v1825_v15 = vld [vmem:[%s2169_s25 + $0x928] sm:$0xff] }
  0xc3   : > { %v1106_v44 = vmin.f32 %v1079_v20, %v1808_v30  ;;  %v1107_v45 = vmin.f32 %v1080_v21, %v1809_v31  ;;  %v1108_v49 = vmin.f32 %v1081_v25, %v1810_v36  ;;  %v1109_v50 = vmin.f32 %v1082_v26, %v1811_v37  ;;  %v1826_v20 = vld [vmem:[%s2169_s25 + $0x930] sm:$0xff]  ;;  %v1827_v21 = vld [vmem:[%s2169_s25 + $0x938] sm:$0xff] }
  0xc4   : > { %v1110_v51 = vmax.f32 %v1083_v27, %v1804_v22  ;;  %v1111_v52 = vmax.f32 %v1084_v28, %v1805_v23  ;;  %v1112_v56 = vmax.f32 %v1085_v32, %v1806_v24  ;;  %v1113_v57 = vmax.f32 %v1086_v33, %v1807_v29  ;;  %v1830_v32 = vld [vmem:[%s2169_s25 + $0x950] sm:$0xff] }
  0xc5   : > { %v1114_v58 = vmax.f32 %v1087_v34, %v1808_v30  ;;  %v1115_v59 = vmax.f32 %v1088_v35, %v1809_v31  ;;  %v1116_v62 = vmax.f32 %v1089_v38, %v1810_v36  ;;  %v1117_v63 = vmax.f32 %v1090_v39, %v1811_v37  ;;  %v1828_v30 = vld [vmem:[%s2169_s25 + $0x940] sm:$0xff]  ;;  %v1829_v31 = vld [vmem:[%s2169_s25 + $0x948] sm:$0xff]  ;;  %v1831_v37 = vld [vmem:[%s2169_s25 + $0x958] sm:$0xff] }
  0xc6   : > { %v1129_v0 = vmin.f32 %v1102_v40, %v1812_v46  ;;  %v1130_v1 = vmin.f32 %v1103_v41, %v1813_v47  ;;  %v1131_v2 = vmin.f32 %v1104_v42, %v1814_v48  ;;  %v1132_v3 = vmin.f32 %v1105_v43, %v1815_v53  ;;  %v1832_v38 = vld [vmem:[%s2169_s25 + $0x960] sm:$0xff]  ;;  %v1833_v39 = vld [vmem:[%s2169_s25 + $0x968] sm:$0xff] }
  0xc7   : > { %v1133_v4 = vmin.f32 %v1106_v44, %v1816_v54  ;;  %v1134_v5 = vmin.f32 %v1107_v45, %v1817_v55  ;;  %v1135_v9 = vmin.f32 %v1108_v49, %v1818_v60  ;;  %v1136_v10 = vmin.f32 %v1109_v50, %v1819_v61  ;;  %v1834_v44 = vld [vmem:[%s2169_s25 + $0x970] sm:$0xff]  ;;  %v1835_v45 = vld [vmem:[%s2169_s25 + $0x978] sm:$0xff] }
  0xc8   : > { %v1137_v11 = vmax.f32 %v1110_v51, %v1812_v46  ;;  %v1138_v12 = vmax.f32 %v1111_v52, %v1813_v47  ;;  %v1139_v16 = vmax.f32 %v1112_v56, %v1814_v48  ;;  %v1140_v17 = vmax.f32 %v1113_v57, %v1815_v53  ;;  %v1838_v56 = vld [vmem:[%s2169_s25 + $0x990] sm:$0xff] }
  0xc9   : > { %v1141_v18 = vmax.f32 %v1114_v58, %v1816_v54  ;;  %v1142_v19 = vmax.f32 %v1115_v59, %v1817_v55  ;;  %v1143_v22 = vmax.f32 %v1116_v62, %v1818_v60  ;;  %v1144_v23 = vmax.f32 %v1117_v63, %v1819_v61  ;;  %v1836_v54 = vld [vmem:[%s2169_s25 + $0x980] sm:$0xff]  ;;  %v1837_v55 = vld [vmem:[%s2169_s25 + $0x988] sm:$0xff]  ;;  %v1839_v61 = vld [vmem:[%s2169_s25 + $0x998] sm:$0xff] }
  0xca   : > { %v1156_v24 = vmin.f32 %v1129_v0, %v1820_v6  ;;  %v1157_v25 = vmin.f32 %v1130_v1, %v1821_v7  ;;  %v1158_v26 = vmin.f32 %v1131_v2, %v1822_v8  ;;  %v1159_v27 = vmin.f32 %v1132_v3, %v1823_v13  ;;  %v1840_v62 = vld [vmem:[%s2169_s25 + $0x9a0] sm:$0xff]  ;;  %v1841_v63 = vld [vmem:[%s2169_s25 + $0x9a8] sm:$0xff] }
  0xcb   : > { %v1160_v28 = vmin.f32 %v1133_v4, %v1824_v14  ;;  %v1161_v29 = vmin.f32 %v1134_v5, %v1825_v15  ;;  %v1162_v33 = vmin.f32 %v1135_v9, %v1826_v20  ;;  %v1163_v34 = vmin.f32 %v1136_v10, %v1827_v21  ;;  %v1842_v4 = vld [vmem:[%s2169_s25 + $0x9b0] sm:$0xff]  ;;  %v1843_v5 = vld [vmem:[%s2169_s25 + $0x9b8] sm:$0xff] }
  0xcc   : > { %v1164_v35 = vmax.f32 %v1137_v11, %v1820_v6  ;;  %v1165_v36 = vmax.f32 %v1138_v12, %v1821_v7  ;;  %v1166_v40 = vmax.f32 %v1139_v16, %v1822_v8  ;;  %v1167_v41 = vmax.f32 %v1140_v17, %v1823_v13  ;;  %v1846_v16 = vld [vmem:[%s2169_s25 + $0x9d0] sm:$0xff] }
  0xcd   : > { %v1168_v42 = vmax.f32 %v1141_v18, %v1824_v14  ;;  %v1169_v43 = vmax.f32 %v1142_v19, %v1825_v15  ;;  %v1170_v46 = vmax.f32 %v1143_v22, %v1826_v20  ;;  %v1171_v47 = vmax.f32 %v1144_v23, %v1827_v21  ;;  %v1844_v14 = vld [vmem:[%s2169_s25 + $0x9c0] sm:$0xff]  ;;  %v1845_v15 = vld [vmem:[%s2169_s25 + $0x9c8] sm:$0xff]  ;;  %v1847_v21 = vld [vmem:[%s2169_s25 + $0x9d8] sm:$0xff] }
  0xce   : > { %v1183_v48 = vmin.f32 %v1156_v24, %v1828_v30  ;;  %v1184_v49 = vmin.f32 %v1157_v25, %v1829_v31  ;;  %v1185_v50 = vmin.f32 %v1158_v26, %v1830_v32  ;;  %v1186_v51 = vmin.f32 %v1159_v27, %v1831_v37  ;;  %v1848_v22 = vld [vmem:[%s2169_s25 + $0x9e0] sm:$0xff]  ;;  %v1849_v23 = vld [vmem:[%s2169_s25 + $0x9e8] sm:$0xff] }
  0xcf   : > { %v1187_v52 = vmin.f32 %v1160_v28, %v1832_v38  ;;  %v1188_v53 = vmin.f32 %v1161_v29, %v1833_v39  ;;  %v1189_v57 = vmin.f32 %v1162_v33, %v1834_v44  ;;  %v1190_v58 = vmin.f32 %v1163_v34, %v1835_v45  ;;  %v1850_v28 = vld [vmem:[%s2169_s25 + $0x9f0] sm:$0xff]  ;;  %v1851_v29 = vld [vmem:[%s2169_s25 + $0x9f8] sm:$0xff] }
  0xd0   : > { %v1191_v59 = vmax.f32 %v1164_v35, %v1828_v30  ;;  %v1192_v60 = vmax.f32 %v1165_v36, %v1829_v31  ;;  %v1193_v0 = vmax.f32 %v1166_v40, %v1830_v32  ;;  %v1194_v1 = vmax.f32 %v1167_v41, %v1831_v37 }
  0xd1   : > { %v1195_v2 = vmax.f32 %v1168_v42, %v1832_v38  ;;  %v1196_v3 = vmax.f32 %v1169_v43, %v1833_v39  ;;  %v1197_v6 = vmax.f32 %v1170_v46, %v1834_v44  ;;  %v1198_v7 = vmax.f32 %v1171_v47, %v1835_v45 }
  0xd2   : > { %v1210_v8 = vmin.f32 %v1183_v48, %v1836_v54  ;;  %v1211_v9 = vmin.f32 %v1184_v49, %v1837_v55  ;;  %v1212_v10 = vmin.f32 %v1185_v50, %v1838_v56  ;;  %v1213_v11 = vmin.f32 %v1186_v51, %v1839_v61 }
  0xd3   : > { %v1214_v12 = vmin.f32 %v1187_v52, %v1840_v62  ;;  %v1215_v13 = vmin.f32 %v1188_v53, %v1841_v63  ;;  %v1216_v17 = vmin.f32 %v1189_v57, %v1842_v4  ;;  %v1217_v18 = vmin.f32 %v1190_v58, %v1843_v5  ;;  %1256 = sbr.rel (%p1852_p7) target bundleno = 225 (0xe1), region = 32 }
  0xd4   : > { %v1218_v19 = vmax.f32 %v1191_v59, %v1836_v54  ;;  %v1219_v20 = vmax.f32 %v1192_v60, %v1837_v55  ;;  %v1220_v24 = vmax.f32 %v1193_v0, %v1838_v56  ;;  %v1221_v25 = vmax.f32 %v1194_v1, %v1839_v61 }
  0xd5   : > { %v1222_v26 = vmax.f32 %v1195_v2, %v1840_v62  ;;  %v1223_v27 = vmax.f32 %v1196_v3, %v1841_v63  ;;  %v1224_v30 = vmax.f32 %v1197_v6, %v1842_v4  ;;  %v1225_v31 = vmax.f32 %v1198_v7, %v1843_v5 }
  0xd6   : > { %v1237_v32 = vmin.f32 %v1210_v8, %v1844_v14  ;;  %v1238_v33 = vmin.f32 %v1211_v9, %v1845_v15  ;;  %v1239_v34 = vmin.f32 %v1212_v10, %v1846_v16  ;;  %v1240_v35 = vmin.f32 %v1213_v11, %v1847_v21 }
  0xd7   : > { %v1241_v36 = vmin.f32 %v1214_v12, %v1848_v22  ;;  %v1242_v37 = vmin.f32 %v1215_v13, %v1849_v23  ;;  %v2507_v38 = vmin.f32 %v1216_v17, %v1850_v28  ;;  %v2509_v39 = vmin.f32 %v1217_v18, %v1851_v29 }
  0xd8   : > { %v2511_v40 = vmax.f32 %v1218_v19, %v1844_v14  ;;  %v2513_v41 = vmax.f32 %v1219_v20, %v1845_v15  ;;  %v2515_v42 = vmax.f32 %v1220_v24, %v1846_v16  ;;  %v2517_v43 = vmax.f32 %v1221_v25, %v1847_v21  ;;  %1257 = vst [vmem:[#allocation2] sm:$0xff] (!%p1852_p7), %v1237_v32 }
  0xd9   : > { %v2519_v44 = vmax.f32 %v1222_v26, %v1848_v22  ;;  %v2521_v45 = vmax.f32 %v1223_v27, %v1849_v23  ;;  %v2523_v46 = vmax.f32 %v1224_v30, %v1850_v28  ;;  %v2525_v47 = vmax.f32 %v1225_v31, %v1851_v29  ;;  %1258 = vst [vmem:[#allocation2 + $0x8] sm:$0xff] (!%p1852_p7), %v1238_v33 }
  0xda   : > { %1259 = vst [vmem:[#allocation2 + $0x10] sm:$0xff] %v1239_v34  ;;  %1260 = vst [vmem:[#allocation2 + $0x18] sm:$0xff] %v1240_v35 }
  0xdb   : > { %1261 = vst [vmem:[#allocation2 + $0x20] sm:$0xff] %v1241_v36  ;;  %1262 = vst [vmem:[#allocation2 + $0x28] sm:$0xff] %v1242_v37 }
  0xdc   : > { %1263 = vst [vmem:[#allocation2 + $0x30] sm:$0xff] %v2507_v38  ;;  %1264 = vst [vmem:[#allocation2 + $0x38] sm:$0xff] %v2509_v39 }
  0xdd   : > { %1265 = vst [vmem:[#allocation3] sm:$0xff] %v2511_v40  ;;  %1266 = vst [vmem:[#allocation3 + $0x8] sm:$0xff] %v2513_v41 }
  0xde   : > { %1267 = vst [vmem:[#allocation3 + $0x10] sm:$0xff] %v2515_v42  ;;  %1268 = vst [vmem:[#allocation3 + $0x18] sm:$0xff] %v2517_v43 }
  0xdf   : > { %1269 = vst [vmem:[#allocation3 + $0x20] sm:$0xff] %v2519_v44  ;;  %1270 = vst [vmem:[#allocation3 + $0x28] sm:$0xff] %v2521_v45 }
  0xe0   : > { %1271 = vst [vmem:[#allocation3 + $0x30] sm:$0xff] %v2523_v46  ;;  %1272 = vst [vmem:[#allocation3 + $0x38] sm:$0xff] %v2525_v47 }
  0xe1 PF: > { %p1853_p5 = scmp.le.s32.totalorder %s2018_s12, 0 }
  0xe2   : > { %v1281_v55 = vld [vmem:[#allocation2 + $0x20] sm:$0xff] (!%p1853_p5)  ;;  %v1282_v56 = vld [vmem:[#allocation2 + $0x28] sm:$0xff] (!%p1853_p5) }
  0xe3   : > { %1276 = sbr.rel (%p1853_p5) target bundleno = 238 (0xee), region = 36  ;;  %v1289_v58 = vmin.f32 (!%p1853_p5), %v1281_v55, %v1241_v36  ;;  %v1290_v59 = vmin.f32 (!%p1853_p5), %v1282_v56, %v1242_v37  ;;  %v1283_v60 = vld [vmem:[#allocation2 + $0x30] sm:$0xff] (!%p1853_p5)  ;;  %v1284_v61 = vld [vmem:[#allocation2 + $0x38] sm:$0xff] (!%p1853_p5) }
  0xe4   : > { %v1301_v62 = vld [vmem:[#allocation3] sm:$0xff] (!%p1853_p5)  ;;  %v1291_v63 = vmin.f32 (!%p1853_p5), %v1283_v60, %v2507_v38  ;;  %v1292_v0 = vmin.f32 (!%p1853_p5), %v1284_v61, %v2509_v39  ;;  %v1302_v2 = vld [vmem:[#allocation3 + $0x8] sm:$0xff] (!%p1853_p5) }
  0xe5   : > { %v1309_v1 = vmax.f32 (!%p1853_p5), %v1301_v62, %v2511_v40  ;;  %v1303_v3 = vld [vmem:[#allocation3 + $0x10] sm:$0xff] (!%p1853_p5)  ;;  %v1304_v4 = vld [vmem:[#allocation3 + $0x18] sm:$0xff] (!%p1853_p5)  ;;  %1297 = vst [vmem:[#allocation2 + $0x20] sm:$0xff] (!%p1853_p5), %v1289_v58  ;;  %1298 = vst [vmem:[#allocation2 + $0x28] sm:$0xff] (!%p1853_p5), %v1290_v59  ;;  %v1310_v5 = vmax.f32 (!%p1853_p5), %v1302_v2, %v2513_v41 }
  0xe6   : > { %v1277_v48 = vld [vmem:[#allocation2] sm:$0xff] (!%p1853_p5)  ;;  %v1311_v6 = vmax.f32 (!%p1853_p5), %v1303_v3, %v2515_v42  ;;  %v1312_v7 = vmax.f32 (!%p1853_p5), %v1304_v4, %v2517_v43  ;;  %v1306_v9 = vld [vmem:[#allocation3 + $0x28] sm:$0xff] (!%p1853_p5)  ;;  %1299 = vst [vmem:[#allocation2 + $0x30] sm:$0xff] (!%p1853_p5), %v1291_v63  ;;  %1300 = vst [vmem:[#allocation2 + $0x38] sm:$0xff] (!%p1853_p5), %v1292_v0 }
  0xe7   : > { %v1278_v49 = vld [vmem:[#allocation2 + $0x8] sm:$0xff] (!%p1853_p5)  ;;  %v1285_v51 = vmin.f32 (!%p1853_p5), %v1277_v48, %v1237_v32  ;;  %v1305_v8 = vld [vmem:[#allocation3 + $0x20] sm:$0xff] (!%p1853_p5)  ;;  %v1307_v10 = vld [vmem:[#allocation3 + $0x30] sm:$0xff] (!%p1853_p5)  ;;  %1317 = vst [vmem:[#allocation3] sm:$0xff] (!%p1853_p5), %v1309_v1  ;;  %v1314_v12 = vmax.f32 (!%p1853_p5), %v1306_v9, %v2521_v45 }
  0xe8   : > { %v1279_v50 = vld [vmem:[#allocation2 + $0x10] sm:$0xff] (!%p1853_p5)  ;;  %v1286_v52 = vmin.f32 (!%p1853_p5), %v1278_v49, %v1238_v33  ;;  %v1280_v54 = vld [vmem:[#allocation2 + $0x18] sm:$0xff] (!%p1853_p5)  ;;  %v1313_v11 = vmax.f32 (!%p1853_p5), %v1305_v8, %v2519_v44  ;;  %v1315_v13 = vmax.f32 (!%p1853_p5), %v1307_v10, %v2523_v46  ;;  %1318 = vst [vmem:[#allocation3 + $0x8] sm:$0xff] (!%p1853_p5), %v1310_v5  ;;  %1319 = vst [vmem:[#allocation3 + $0x10] sm:$0xff] (!%p1853_p5), %v1311_v6 }
  0xe9   : > { %v1287_v53 = vmin.f32 (!%p1853_p5), %v1279_v50, %v1239_v34  ;;  %v1288_v57 = vmin.f32 (!%p1853_p5), %v1280_v54, %v1240_v35  ;;  %1293 = vst [vmem:[#allocation2] sm:$0xff] (!%p1853_p5), %v1285_v51  ;;  %v1308_v14 = vld [vmem:[#allocation3 + $0x38] sm:$0xff] (!%p1853_p5)  ;;  %1320 = vst [vmem:[#allocation3 + $0x18] sm:$0xff] (!%p1853_p5), %v1312_v7 }
  0xea   : > { %1294 = vst [vmem:[#allocation2 + $0x8] sm:$0xff] %v1286_v52  ;;  %v1316_v15 = vmax.f32 %v1308_v14, %v2525_v47  ;;  %1321 = vst [vmem:[#allocation3 + $0x20] sm:$0xff] %v1313_v11 }
  0xeb   : > { %1295 = vst [vmem:[#allocation2 + $0x10] sm:$0xff] %v1287_v53  ;;  %1296 = vst [vmem:[#allocation2 + $0x18] sm:$0xff] %v1288_v57 }
  0xec   : > { %1322 = vst [vmem:[#allocation3 + $0x28] sm:$0xff] %v1314_v12  ;;  %1323 = vst [vmem:[#allocation3 + $0x30] sm:$0xff] %v1315_v13 }
  0xed   : > { %1324 = vst [vmem:[#allocation3 + $0x38] sm:$0xff] %v1316_v15 }
  0xee PF: > { %p1854_p6 = scmp.ne.s32.totalorder %s2018_s12, 3 }
  0xf0   : > { %1328 = sbr.rel (%p1854_p6) target bundleno = 462 (0x1ce), region = 40  ;;  %v1333_v20 = vld [vmem:[#allocation2 + $0x20] sm:$0xff] (!%p1854_p6)  ;;  %v1334_v21 = vld [vmem:[#allocation2 + $0x28] sm:$0xff] (!%p1854_p6) }
  0xf1   : > { %v1335_v22 = vld [vmem:[#allocation2 + $0x30] sm:$0xff] (!%p1854_p6)  ;;  %v1336_v23 = vld [vmem:[#allocation2 + $0x38] sm:$0xff] (!%p1854_p6) }
  0xf2   : > { %v1331_v18 = vld [vmem:[#allocation2 + $0x10] sm:$0xff] (!%p1854_p6)  ;;  %v1332_v19 = vld [vmem:[#allocation2 + $0x18] sm:$0xff] (!%p1854_p6)  ;;  %v1355_v26 = vld [vmem:[#allocation3] sm:$0xff] (!%p1854_p6) }
  0xf3   : > { %v1339_v27 = vmin.f32 (!%p1854_p6), %v1331_v18, %v1335_v22  ;;  %v1340_v28 = vmin.f32 (!%p1854_p6), %v1332_v19, %v1336_v23  ;;  %v1356_v29 = vld [vmem:[#allocation3 + $0x8] sm:$0xff] (!%p1854_p6)  ;;  %v1357_v30 = vld [vmem:[#allocation3 + $0x10] sm:$0xff] (!%p1854_p6) }
  0xf4   : > { %v1329_v16 = vld [vmem:[#allocation2] sm:$0xff] (!%p1854_p6)  ;;  %v1358_v31 = vld [vmem:[#allocation3 + $0x18] sm:$0xff] (!%p1854_p6)  ;;  %v1360_v34 = vld [vmem:[#allocation3 + $0x28] sm:$0xff] (!%p1854_p6) }
  0xf5   : > { %v1330_v17 = vld [vmem:[#allocation2 + $0x8] sm:$0xff] (!%p1854_p6)  ;;  %v1337_v24 = vmin.f32 (!%p1854_p6), %v1329_v16, %v1333_v20  ;;  %v1359_v33 = vld [vmem:[#allocation3 + $0x20] sm:$0xff] (!%p1854_p6)  ;;  %v1361_v35 = vld [vmem:[#allocation3 + $0x30] sm:$0xff] (!%p1854_p6)  ;;  %v1342_v36 = vmin.f32 (!%p1854_p6), %v1339_v27, %v1340_v28  ;;  %v1364_v39 = vmax.f32 (!%p1854_p6), %v1356_v29, %v1360_v34 }
  0xf6   : > { %v1338_v25 = vmin.f32 (!%p1854_p6), %v1330_v17, %v1334_v21  ;;  %v1362_v37 = vld [vmem:[#allocation3 + $0x38] sm:$0xff] (!%p1854_p6)  ;;  %v1363_v38 = vmax.f32 (!%p1854_p6), %v1355_v26, %v1359_v33  ;;  %v1365_v40 = vmax.f32 (!%p1854_p6), %v1357_v30, %v1361_v35 }
  0xf7   : > { %v1366_v41 = vmax.f32 %v1358_v31, %v1362_v37 }
  0xf8   : > { %v1341_v32 = vmin.f32 %v1337_v24, %v1338_v25  ;;  %v1367_v43 = vmax.f32 %v1363_v38, %v1364_v39 }
  0xf9   : > { %v1368_v44 = vmax.f32 %v1365_v40, %v1366_v41 }
  0xfa   : > { %v1343_v42 = vmin.f32 %v1341_v32, %v1342_v36 }
  0xfb   : > { %v1369_v45 = vmax.f32 %v1367_v43, %v1368_v44 }
  0xfc   : > { %1344 = vmin.xlane.f32.xlu0 %v1343_v42 }
 0x100   : > { %1370 = vmax.xlane.f32.xlu0 %v1369_v45 }
 0x189   : > { %v1345_v46 = vpop.xlane.xlu0 %1344 }
 0x18a   : > { %v1346_v47 = vrot.slane %v1345_v46, 4 }
 0x18c   : > { %v1347_v48 = vmin.f32 %v1345_v46, %v1346_v47 }
 0x18d   : > { %v1371_v49 = vpop.xlane.xlu0 %1370 }
 0x18e   : > { %v1348_v50 = vrot.slane %v1347_v48, 2  ;;  %v1372_v51 = vrot.slane %v1371_v49, 4 }
 0x190   : > { %v1373_v52 = vmax.f32 %v1371_v49, %v1372_v51  ;;  %v1349_v53 = vmin.f32 %v1347_v48, %v1348_v50 }
 0x192   : > { %v1374_v54 = vrot.slane %v1373_v52, 2  ;;  %v1350_v55 = vrot.slane %v1349_v53, 1 }
 0x194   : > { %v1375_v56 = vmax.f32 %v1373_v52, %v1374_v54  ;;  %v1351_v57 = vmin.f32 %v1349_v53, %v1350_v55 }
 0x196   : > { %1860 = vpush %v1351_v57  ;;  %v1376_v58 = vrot.slane %v1375_v56, 1 }
 0x198   : > { %v1377_v59 = vmax.f32 %v1375_v56, %v1376_v58 }
 0x19a   : > { %1862 = vpush %v1377_v59 }
 0x1c7   : > { %s1861_s12 = spop %1860 }
 0x1c8   : > { %v1353_v60 = vstv %s1861_s12 }
 0x1c9   : > { %1354 = vst [vmem:[%s2180_s17] sm:$0xff] %v1353_v60 }
 0x1cb   : > { %s1863_s13 = spop %1862 }
 0x1cc   : > { %v1379_v61 = vstv %s1863_s13 }
 0x1cd   : > { %1380 = vst [vmem:[%s2185_s28] sm:$0xff] %v1379_v61 }
 0x1ce PF: > { %s16_s16 = sadd.s32 1, %s2034_s16   ;;  %s2582_s9 = smov %s2010_s10 }
 0x1cf   : > { %p13_p8 = scmp.ge.s32.totalorder %s16_s16, 10   ;;  %s2583_s10 = smov %s2014_s11 }
 0x1d0   : > { %s2584_s11 = smov %s2122_s29  ;;  %s2585_s12 = smov %s2026_s14 }
 0x1d1   : > { %s2586_s13 = smov %s2030_s15  ;;  %s2587_s14 = smov %s2590_s18 }
 0x1d2   : > { %s2588_s15 = smov %s2594_s19  ;;  %15 = sbr.rel (!%p13_p8) target bundleno = 5 (0x5), region = 127 }
 0x1d9   :  { %1414 = vsyncpa [#allocation5], 1 }
 0x1da   :  { %1416 = vsyncpa [#allocation5 + $0x1], 1 }

</bundles_post_ra>
